<compile_context>
chip_gen: v6e
topology: v6e:2x2x1
jax: 0.10.0
libtpu: 0.0.40
codegen_flags: <defaults>
</compile_context>

<pallas_src>
import jax
import jax.numpy as jnp
from jax import lax
from jax.experimental import pallas as pl
from jax.experimental.pallas import tpu as pltpu

# ---- small config consistent with the module (scaled down) ----
VOCAB = 120
VOCAB_PAD = 128          # lane-dense padded LM-head width
N_EMBD = 128             # channel dim on the 128-lane axis
N_HEAD = 4
HEAD_SIZE = N_EMBD // N_HEAD
N_LAYER = 2
BLOCK_SIZE = 16          # sequence length
WINDOW_SIZE = 4          # local attention window (< BLOCK_SIZE so mask is exercised)
FF_HIDDEN = 4 * N_EMBD
EPS = 1e-5
BATCH = 2


def _layernorm(x, g, b):
    mu = jnp.mean(x, axis=-1, keepdims=True)
    var = jnp.mean((x - mu) ** 2, axis=-1, keepdims=True)
    return (x - mu) * lax.rsqrt(var + EPS) * g + b


# ----------------------------- fused kernel -----------------------------

def fused_gpt_kernel(x0_ref, bias_ref,
                     ln1g_ref, ln1b_ref, wqkv_ref, wproj_ref, bproj_ref,
                     ln2g_ref, ln2b_ref, w1_ref, b1_ref, w2_ref, b2_ref,
                     lnfg_ref, lnfb_ref, lmw_ref, lmb_ref,
                     out_ref, x_ref):
    layer = pl.program_id(0)
    last_layer = pl.num_programs(0) - 1

    # ---- load the (already embedded) input once, at the first layer ----
    @pl.when(layer == 0)
    def _():
        x_ref[...] = x0_ref[...]                        # (B*T, C)

    x = x_ref[...]                                      # VMEM-resident residual stream
    BT, C = x.shape
    T = BLOCK_SIZE
    B = BT // T

    # ---- ln1 + multi-head self-attention ----
    y = _layernorm(x, ln1g_ref[0], ln1b_ref[0])
    # packed QKV projection (scale already folded into the Q columns), M = B*T
    qkv = jnp.dot(y.astype(jnp.bfloat16), wqkv_ref[0],
                  preferred_element_type=jnp.float32)   # (B*T, 3C) f32
    qkv = qkv.reshape(B, T, 3 * C)

    # per-head score matmuls, stacked along the leading axis so the softmax
    # (max / exp / reciprocal / sum) runs once for all heads
    scores = []
    for h in range(N_HEAD):
        lo = h * HEAD_SIZE
        qh = qkv[:, :, lo:lo + HEAD_SIZE]               # (B, T, hs)
        kh = qkv[:, :, C + lo:C + lo + HEAD_SIZE]       # (B, T, hs)
        scores.append(jnp.einsum('bqd,bkd->bqk', qh, kh,
                                 preferred_element_type=jnp.float32))
    s = jnp.concatenate(scores, axis=0) + bias_ref[...][None]   # (H*B, T, T)
    m = jnp.max(s, axis=-1, keepdims=True)
    e = jnp.exp(s - m)
    p = e * pl.reciprocal(jnp.sum(e, axis=-1, keepdims=True), approx=True)

    # P @ V per head, then one concat + one K=128 projection matmul
    outs = []
    for h in range(N_HEAD):
        lo = h * HEAD_SIZE
        vh = qkv[:, :, 2 * C + lo:2 * C + lo + HEAD_SIZE]        # (B, T, hs)
        ph = p[h * B:(h + 1) * B]                                # (B, T, T)
        outs.append(jnp.einsum('bqk,bkd->bqd', ph, vh,
                               preferred_element_type=jnp.float32))
    o_cat = jnp.concatenate(outs, axis=-1).reshape(BT, C)        # (B*T, C)
    sa = jnp.dot(o_cat.astype(jnp.bfloat16), wproj_ref[0],
                 preferred_element_type=jnp.float32) + bproj_ref[0]
    x = x + sa                                                   # residual

    # ---- ln2 + feed-forward ----
    y = _layernorm(x, ln2g_ref[0], ln2b_ref[0])
    hdn = jnp.maximum(
        jnp.dot(y.astype(jnp.bfloat16), w1_ref[0],
                preferred_element_type=jnp.float32) + b1_ref[0], 0.0)
    x = x + jnp.dot(hdn.astype(jnp.bfloat16), w2_ref[0],
                    preferred_element_type=jnp.float32) + b2_ref[0]
    x_ref[...] = x

    # ---- final layernorm + LM head (lane-dense padded vocab) ----
    @pl.when(layer == last_layer)
    def _():
        yf = _layernorm(x, lnfg_ref[...], lnfb_ref[...])
        out_ref[...] = (jnp.dot(yf.astype(jnp.bfloat16), lmw_ref[...],
                                preferred_element_type=jnp.float32)
                        + lmb_ref[...])


# ----------------------------- wrapper -----------------------------

def gpt_forward(idx, params):
    B, T = idx.shape
    C = N_EMBD

    # token gather + positional add fused by XLA in plain JAX, flattened to (B*T, C)
    x0 = (jnp.take(params['tok'], idx, axis=0)
          + params['pos'][:T][None]).reshape(B * T, C).astype(jnp.float32)

    # window-only mask (tril buffer is unused in the PyTorch forward)
    row = jnp.arange(T)[:, None]
    col = jnp.arange(T)[None, :]
    attn_bias = jnp.where((col - row) >= (1 + WINDOW_SIZE), -1e30, 0.0
                          ).astype(jnp.float32)                  # (T, T)

    # fold 1/sqrt(head_size) into the Q columns of the packed QKV weight,
    # then stream the big weights as bf16 (f32 accumulation in-kernel)
    scale = HEAD_SIZE ** -0.5
    wqkv = params['wqkv'].at[:, :, :C].multiply(scale).astype(jnp.bfloat16)
    wproj = params['wproj'].astype(jnp.bfloat16)
    w1 = params['w1'].astype(jnp.bfloat16)
    w2 = params['w2'].astype(jnp.bfloat16)

    # pad LM head to lane-dense 128-wide output
    lm_w = jnp.zeros((C, VOCAB_PAD), jnp.float32
                     ).at[:, :VOCAB].set(params['lm_w']).astype(jnp.bfloat16)
    lm_b = jnp.zeros((1, VOCAB_PAD), jnp.float32).at[:, :VOCAB].set(params['lm_b'])

    layer3 = lambda l: (l, 0, 0)
    const2 = lambda l: (0, 0)

    grid_spec = pltpu.PrefetchScalarGridSpec(
        num_scalar_prefetch=0,
        grid=(N_LAYER,),
        in_specs=[
            pl.BlockSpec((B * T, C), const2),                    # x0 (tok+pos)
            pl.BlockSpec((T, T), const2),                        # attn window bias
            pl.BlockSpec((1, 1, C), layer3),                     # ln1_g
            pl.BlockSpec((1, 1, C), layer3),                     # ln1_b
            pl.BlockSpec((1, C, 3 * C), layer3),                 # wqkv (packed, bf16)
            pl.BlockSpec((1, C, C), layer3),                     # wproj (bf16)
            pl.BlockSpec((1, 1, C), layer3),                     # bproj
            pl.BlockSpec((1, 1, C), layer3),                     # ln2_g
            pl.BlockSpec((1, 1, C), layer3),                     # ln2_b
            pl.BlockSpec((1, C, FF_HIDDEN), layer3),             # w1 (bf16)
            pl.BlockSpec((1, 1, FF_HIDDEN), layer3),             # b1
            pl.BlockSpec((1, FF_HIDDEN, C), layer3),             # w2 (bf16)
            pl.BlockSpec((1, 1, C), layer3),                     # b2
            pl.BlockSpec((1, C), const2),                        # lnf_g
            pl.BlockSpec((1, C), const2),                        # lnf_b
            pl.BlockSpec((C, VOCAB_PAD), const2),                # lm_w (padded, bf16)
            pl.BlockSpec((1, VOCAB_PAD), const2),                # lm_b (padded)
        ],
        out_specs=pl.BlockSpec((B * T, VOCAB_PAD), const2),
        scratch_shapes=[pltpu.VMEM((B * T, C), jnp.float32)],    # resident residual stream
    )

    logits_pad = pl.pallas_call(
        fused_gpt_kernel,
        out_shape=jax.ShapeDtypeStruct((B * T, VOCAB_PAD), jnp.float32),
        grid_spec=grid_spec,
        compiler_params=pltpu.CompilerParams(
            dimension_semantics=("arbitrary",)),
    )(x0, attn_bias,
      params['ln1_g'], params['ln1_b'], wqkv, wproj, params['bproj'],
      params['ln2_g'], params['ln2_b'], w1, params['b1'], w2, params['b2'],
      params['lnf_g'], params['lnf_b'], lm_w, lm_b)

    return logits_pad.reshape(B, T, VOCAB_PAD)[:, :, :VOCAB]


# --------------------- params & pure-JAX reference ---------------------

def init_params(key):
    keys = iter(jax.random.split(key, 16))

    def nrm(shape):
        return 0.02 * jax.random.normal(next(keys), shape, jnp.float32)

    C, H, L, V = N_EMBD, FF_HIDDEN, N_LAYER, VOCAB
    return {
        'tok': nrm((V, C)),
        'pos': nrm((BLOCK_SIZE, C)),
        'ln1_g': jnp.ones((L, 1, C), jnp.float32),
        'ln1_b': jnp.zeros((L, 1, C), jnp.float32),
        'wqkv': nrm((L, C, 3 * C)),                    # [wq | wk | wv] packed
        'wproj': nrm((L, C, C)),
        'bproj': jnp.zeros((L, 1, C), jnp.float32),
        'ln2_g': jnp.ones((L, 1, C), jnp.float32),
        'ln2_b': jnp.zeros((L, 1, C), jnp.float32),
        'w1': nrm((L, C, H)),
        'b1': jnp.zeros((L, 1, H), jnp.float32),
        'w2': nrm((L, H, C)),
        'b2': jnp.zeros((L, 1, C), jnp.float32),
        'lnf_g': jnp.ones((1, C), jnp.float32),
        'lnf_b': jnp.zeros((1, C), jnp.float32),
        'lm_w': nrm((C, V)),
        'lm_b': jnp.zeros((1, V), jnp.float32),
    }


def reference_forward(idx, params):
    T = idx.shape[1]
    C = N_EMBD
    x = params['tok'][idx] + params['pos'][:T]
    row = jnp.arange(T)[:, None]
    col = jnp.arange(T)[None, :]
    mask = (col - row) >= (1 + WINDOW_SIZE)
    for l in range(N_LAYER):
        y = _layernorm(x, params['ln1_g'][l], params['ln1_b'][l])
        qkv = y @ params['wqkv'][l]
        q, k, v = qkv[..., :C], qkv[..., C:2 * C], qkv[..., 2 * C:]
        outs = []
        for h in range(N_HEAD):
            sl = slice(h * HEAD_SIZE, (h + 1) * HEAD_SIZE)
            s = jnp.einsum('btd,bsd->bts', q[..., sl], k[..., sl]) * HEAD_SIZE ** -0.5
            s = jnp.where(mask[None], -jnp.inf, s)
            outs.append(jnp.einsum('bts,bsd->btd',
                                   jax.nn.softmax(s, axis=-1), v[..., sl]))
        o = jnp.concatenate(outs, axis=-1) @ params['wproj'][l] + params['bproj'][l]
        x = x + o
        y = _layernorm(x, params['ln2_g'][l], params['ln2_b'][l])
        x = x + jnp.maximum(y @ params['w1'][l] + params['b1'][l], 0.0) \
            @ params['w2'][l] + params['b2'][l]
    y = _layernorm(x, params['lnf_g'], params['lnf_b'])
    return y @ params['lm_w'] + params['lm_b']


if __name__ == "__main__":
    key = jax.random.PRNGKey(0)
    pkey, ikey = jax.random.split(key)
    params = init_params(pkey)
    index = jax.random.randint(ikey, (BATCH, BLOCK_SIZE), 0, VOCAB, dtype=jnp.int32)

    logits = gpt_forward(index, params)
    jax.block_until_ready(logits)

    assert logits.shape == (BATCH, BLOCK_SIZE, VOCAB), logits.shape
    ref = reference_forward(index, params)
    err = float(jnp.max(jnp.abs(logits - ref)))
    # reference is full f32; kernel streams weights in bf16 (f32 accumulation),
    # so a slightly looser tolerance is expected.
    assert err < 2e-2, f"max abs error vs f32 reference: {err}"
    print("KERNEL_OK")
</pallas_src>

<mosaic_0001>
module attributes {stable_mosaic.version = 11 : i64} {
  func.func @fused_gpt_kernel(%arg0: i32, %arg1: memref<32x128xf32, #tpu.memory_space<vmem>>, %arg2: memref<16x16xf32, #tpu.memory_space<vmem>>, %arg3: memref<1x1x128xf32, #tpu.memory_space<vmem>>, %arg4: memref<1x1x128xf32, #tpu.memory_space<vmem>>, %arg5: memref<1x128x384xbf16, #tpu.memory_space<vmem>>, %arg6: memref<1x128x128xbf16, #tpu.memory_space<vmem>>, %arg7: memref<1x1x128xf32, #tpu.memory_space<vmem>>, %arg8: memref<1x1x128xf32, #tpu.memory_space<vmem>>, %arg9: memref<1x1x128xf32, #tpu.memory_space<vmem>>, %arg10: memref<1x128x512xbf16, #tpu.memory_space<vmem>>, %arg11: memref<1x1x512xf32, #tpu.memory_space<vmem>>, %arg12: memref<1x512x128xbf16, #tpu.memory_space<vmem>>, %arg13: memref<1x1x128xf32, #tpu.memory_space<vmem>>, %arg14: memref<1x128xf32, #tpu.memory_space<vmem>>, %arg15: memref<1x128xf32, #tpu.memory_space<vmem>>, %arg16: memref<128x128xbf16, #tpu.memory_space<vmem>>, %arg17: memref<1x128xf32, #tpu.memory_space<vmem>>, %arg18: memref<32x128xf32, #tpu.memory_space<vmem>>, %arg19: memref<32x128xf32, #tpu.memory_space<vmem>>) attributes {dimension_semantics = [#tpu.dimension_semantics<arbitrary>], iteration_bounds = array<i64: 2>, scalar_prefetch = 0 : i64, scratch_operands = 1 : i64, tpu.core_type = #tpu.core_type<tc>, window_params = [{pipeline_mode = #tpu.pipeline_mode<synchronous>, transform_indices = @transform_0, window_bounds = array<i64: 32, 128>}, {pipeline_mode = #tpu.pipeline_mode<synchronous>, transform_indices = @transform_1, window_bounds = array<i64: 16, 16>}, {transform_indices = @transform_2, window_bounds = array<i64: 1, 1, 128>}, {transform_indices = @transform_3, window_bounds = array<i64: 1, 1, 128>}, {transform_indices = @transform_4, window_bounds = array<i64: 1, 128, 384>}, {transform_indices = @transform_5, window_bounds = array<i64: 1, 128, 128>}, {transform_indices = @transform_6, window_bounds = array<i64: 1, 1, 128>}, {transform_indices = @transform_7, window_bounds = array<i64: 1, 1, 128>}, {transform_indices = @transform_8, window_bounds = array<i64: 1, 1, 128>}, {transform_indices = @transform_9, window_bounds = array<i64: 1, 128, 512>}, {transform_indices = @transform_10, window_bounds = array<i64: 1, 1, 512>}, {transform_indices = @transform_11, window_bounds = array<i64: 1, 512, 128>}, {transform_indices = @transform_12, window_bounds = array<i64: 1, 1, 128>}, {pipeline_mode = #tpu.pipeline_mode<synchronous>, transform_indices = @transform_13, window_bounds = array<i64: 1, 128>}, {pipeline_mode = #tpu.pipeline_mode<synchronous>, transform_indices = @transform_14, window_bounds = array<i64: 1, 128>}, {pipeline_mode = #tpu.pipeline_mode<synchronous>, transform_indices = @transform_15, window_bounds = array<i64: 128, 128>}, {pipeline_mode = #tpu.pipeline_mode<synchronous>, transform_indices = @transform_16, window_bounds = array<i64: 1, 128>}, {pipeline_mode = #tpu.pipeline_mode<synchronous>, transform_indices = @transform_17, window_bounds = array<i64: 32, 128>}]} {
    %c0_i32 = arith.constant 0 : i32
    %0 = arith.cmpi eq, %arg0, %c0_i32 : i32
    %1 = arith.extui %0 : i1 to i32
    %c0_i32_0 = arith.constant 0 : i32
    %2 = arith.cmpi ne, %1, %c0_i32_0 : i32
    scf.if %2 {
      %c0_64 = arith.constant 0 : index
      %c0_65 = arith.constant 0 : index
      %134 = vector.load %arg1[%c0_64, %c0_65] : memref<32x128xf32, #tpu.memory_space<vmem>>, vector<32x128xf32>
      %c0_66 = arith.constant 0 : index
      %c0_67 = arith.constant 0 : index
      %135 = vector.load %arg19[%c0_66, %c0_67] : memref<32x128xf32, #tpu.memory_space<vmem>>, vector<32x128xf32>
      tpu.vector_store %arg19[%c0_66, %c0_67], %134 {strides = array<i32>} : memref<32x128xf32, #tpu.memory_space<vmem>>, vector<32x128xf32>,
    } else {
    }
    %c0 = arith.constant 0 : index
    %c0_1 = arith.constant 0 : index
    %3 = vector.load %arg19[%c0, %c0_1] : memref<32x128xf32, #tpu.memory_space<vmem>>, vector<32x128xf32>
    %c0_2 = arith.constant 0 : index
    %c0_3 = arith.constant 0 : index
    %c0_4 = arith.constant 0 : index
    %4 = vector.load %arg3[%c0_2, %c0_3, %c0_4] : memref<1x1x128xf32, #tpu.memory_space<vmem>>, vector<1x1x128xf32>
    %5 = vector.shape_cast %4 : vector<1x1x128xf32> to vector<1x128xf32>
    %c0_5 = arith.constant 0 : index
    %c0_6 = arith.constant 0 : index
    %c0_7 = arith.constant 0 : index
    %6 = vector.load %arg4[%c0_5, %c0_6, %c0_7] : memref<1x1x128xf32, #tpu.memory_space<vmem>>, vector<1x1x128xf32>
    %7 = vector.shape_cast %6 : vector<1x1x128xf32> to vector<1x128xf32>
    %cst = arith.constant dense<0.000000e+00> : vector<32xf32>
    %8 = vector.multi_reduction <add>, %3, %cst [1] : vector<32x128xf32> to vector<32xf32>
    %9 = vector.shape_cast %8 : vector<32xf32> to vector<32x1xf32>
    %cst_8 = arith.constant 1.280000e+02 : f32
    %10 = vector.broadcast %cst_8 : f32 to vector<32x1xf32>
    %11 = arith.divf %9, %10 : vector<32x1xf32>
    %12 = vector.broadcast %11 : vector<32x1xf32> to vector<32x128xf32>
    %13 = arith.subf %3, %12 : vector<32x128xf32>
    %14 = arith.mulf %13, %13 : vector<32x128xf32>
    %cst_9 = arith.constant dense<0.000000e+00> : vector<32xf32>
    %15 = vector.multi_reduction <add>, %14, %cst_9 [1] : vector<32x128xf32> to vector<32xf32>
    %16 = vector.shape_cast %15 : vector<32xf32> to vector<32x1xf32>
    %cst_10 = arith.constant 1.280000e+02 : f32
    %17 = vector.broadcast %cst_10 : f32 to vector<32x1xf32>
    %18 = arith.divf %16, %17 : vector<32x1xf32>
    %19 = vector.broadcast %11 : vector<32x1xf32> to vector<32x128xf32>
    %20 = arith.subf %3, %19 : vector<32x128xf32>
    %cst_11 = arith.constant 9.99999974E-6 : f32
    %21 = vector.broadcast %cst_11 : f32 to vector<32x1xf32>
    %22 = arith.addf %18, %21 : vector<32x1xf32>
    %23 = math.rsqrt %22 : vector<32x1xf32>
    %24 = vector.broadcast %23 : vector<32x1xf32> to vector<32x128xf32>
    %25 = arith.mulf %20, %24 : vector<32x128xf32>
    %26 = vector.broadcast %5 : vector<1x128xf32> to vector<32x128xf32>
    %27 = arith.mulf %25, %26 : vector<32x128xf32>
    %28 = vector.broadcast %7 : vector<1x128xf32> to vector<32x128xf32>
    %29 = arith.addf %27, %28 : vector<32x128xf32>
    %30 = arith.truncf %29 : vector<32x128xf32> to vector<32x128xbf16>
    %c0_12 = arith.constant 0 : index
    %c0_13 = arith.constant 0 : index
    %c0_14 = arith.constant 0 : index
    %31 = vector.load %arg5[%c0_12, %c0_13, %c0_14] : memref<1x128x384xbf16, #tpu.memory_space<vmem>>, vector<1x128x384xbf16>
    %32 = vector.shape_cast %31 : vector<1x128x384xbf16> to vector<128x384xbf16>
    %cst_15 = arith.constant dense<0.000000e+00> : vector<32x384xf32>
    %33 = tpu.matmul %30, %32, %cst_15 {dimension_numbers = #tpu.dot_dimension_numbers<[1], [0], [0], [1], [0, 0, 1, 1], [], []>} : vector<32x128xbf16>, vector<128x384xbf16>, vector<32x384xf32> -> vector<32x384xf32>
    %34 = vector.shape_cast %33 : vector<32x384xf32> to vector<2x16x384xf32>
    %35 = vector.extract_strided_slice %34 {offsets = [0, 0, 0], sizes = [2, 16, 32], strides = [1, 1, 1]} : vector<2x16x384xf32> to vector<2x16x32xf32>
    %36 = vector.extract_strided_slice %34 {offsets = [0, 0, 128], sizes = [2, 16, 32], strides = [1, 1, 1]} : vector<2x16x384xf32> to vector<2x16x32xf32>
    "tpu.trace_start"() <{level = 10 : i32, message = "bqd,bkd->bqk"}> : () -> ()
    %cst_16 = arith.constant dense<0.000000e+00> : vector<2x16x16xf32>
    %37 = tpu.matmul %35, %36, %cst_16 {dimension_numbers = #tpu.dot_dimension_numbers<[2], [2], [1], [1], [0, 0, 0, 1, 1, 1], [0], [0]>} : vector<2x16x32xf32>, vector<2x16x32xf32>, vector<2x16x16xf32> -> vector<2x16x16xf32>
    "tpu.trace_stop"() : () -> ()
    %38 = vector.extract_strided_slice %34 {offsets = [0, 0, 32], sizes = [2, 16, 32], strides = [1, 1, 1]} : vector<2x16x384xf32> to vector<2x16x32xf32>
    %39 = vector.extract_strided_slice %34 {offsets = [0, 0, 160], sizes = [2, 16, 32], strides = [1, 1, 1]} : vector<2x16x384xf32> to vector<2x16x32xf32>
    "tpu.trace_start"() <{level = 10 : i32, message = "bqd,bkd->bqk"}> : () -> ()
    %cst_17 = arith.constant dense<0.000000e+00> : vector<2x16x16xf32>
    %40 = tpu.matmul %38, %39, %cst_17 {dimension_numbers = #tpu.dot_dimension_numbers<[2], [2], [1], [1], [0, 0, 0, 1, 1, 1], [0], [0]>} : vector<2x16x32xf32>, vector<2x16x32xf32>, vector<2x16x16xf32> -> vector<2x16x16xf32>
    "tpu.trace_stop"() : () -> ()
    %41 = vector.extract_strided_slice %34 {offsets = [0, 0, 64], sizes = [2, 16, 32], strides = [1, 1, 1]} : vector<2x16x384xf32> to vector<2x16x32xf32>
    %42 = vector.extract_strided_slice %34 {offsets = [0, 0, 192], sizes = [2, 16, 32], strides = [1, 1, 1]} : vector<2x16x384xf32> to vector<2x16x32xf32>
    "tpu.trace_start"() <{level = 10 : i32, message = "bqd,bkd->bqk"}> : () -> ()
    %cst_18 = arith.constant dense<0.000000e+00> : vector<2x16x16xf32>
    %43 = tpu.matmul %41, %42, %cst_18 {dimension_numbers = #tpu.dot_dimension_numbers<[2], [2], [1], [1], [0, 0, 0, 1, 1, 1], [0], [0]>} : vector<2x16x32xf32>, vector<2x16x32xf32>, vector<2x16x16xf32> -> vector<2x16x16xf32>
    "tpu.trace_stop"() : () -> ()
    %44 = vector.extract_strided_slice %34 {offsets = [0, 0, 96], sizes = [2, 16, 32], strides = [1, 1, 1]} : vector<2x16x384xf32> to vector<2x16x32xf32>
    %45 = vector.extract_strided_slice %34 {offsets = [0, 0, 224], sizes = [2, 16, 32], strides = [1, 1, 1]} : vector<2x16x384xf32> to vector<2x16x32xf32>
    "tpu.trace_start"() <{level = 10 : i32, message = "bqd,bkd->bqk"}> : () -> ()
    %cst_19 = arith.constant dense<0.000000e+00> : vector<2x16x16xf32>
    %46 = tpu.matmul %44, %45, %cst_19 {dimension_numbers = #tpu.dot_dimension_numbers<[2], [2], [1], [1], [0, 0, 0, 1, 1, 1], [0], [0]>} : vector<2x16x32xf32>, vector<2x16x32xf32>, vector<2x16x16xf32> -> vector<2x16x16xf32>
    "tpu.trace_stop"() : () -> ()
    %47 = tpu.concatenate %37, %40, %43, %46 in 0 : vector<2x16x16xf32>, vector<2x16x16xf32>, vector<2x16x16xf32>, vector<2x16x16xf32> -> vector<8x16x16xf32>
    %c0_20 = arith.constant 0 : index
    %c0_21 = arith.constant 0 : index
    %48 = vector.load %arg2[%c0_20, %c0_21] : memref<16x16xf32, #tpu.memory_space<vmem>>, vector<16x16xf32>
    %49 = vector.shape_cast %48 : vector<16x16xf32> to vector<1x16x16xf32>
    %50 = vector.broadcast %49 : vector<1x16x16xf32> to vector<8x16x16xf32>
    %51 = arith.addf %47, %50 : vector<8x16x16xf32>
    %cst_22 = arith.constant dense<0xFF800000> : vector<8x16xf32>
    %52 = vector.multi_reduction <maximumf>, %51, %cst_22 [2] : vector<8x16x16xf32> to vector<8x16xf32>
    %53 = vector.shape_cast %52 : vector<8x16xf32> to vector<8x16x1xf32>
    %54 = vector.broadcast %53 : vector<8x16x1xf32> to vector<8x16x16xf32>
    %55 = arith.subf %51, %54 : vector<8x16x16xf32>
    %56 = math.exp %55 : vector<8x16x16xf32>
    %cst_23 = arith.constant dense<0.000000e+00> : vector<8x16xf32>
    %57 = vector.multi_reduction <add>, %56, %cst_23 [2] : vector<8x16x16xf32> to vector<8x16xf32>
    %58 = vector.shape_cast %57 : vector<8x16xf32> to vector<8x16x1xf32>
    %59 = tpu.reciprocal %58 {approx = true} : vector<8x16x1xf32> -> vector<8x16x1xf32>
    %60 = vector.broadcast %59 : vector<8x16x1xf32> to vector<8x16x16xf32>
    %61 = arith.mulf %56, %60 : vector<8x16x16xf32>
    %62 = vector.extract_strided_slice %34 {offsets = [0, 0, 256], sizes = [2, 16, 32], strides = [1, 1, 1]} : vector<2x16x384xf32> to vector<2x16x32xf32>
    %63 = vector.extract_strided_slice %61 {offsets = [0, 0, 0], sizes = [2, 16, 16], strides = [1, 1, 1]} : vector<8x16x16xf32> to vector<2x16x16xf32>
    "tpu.trace_start"() <{level = 10 : i32, message = "bqk,bkd->bqd"}> : () -> ()
    %cst_24 = arith.constant dense<0.000000e+00> : vector<2x16x32xf32>
    %64 = tpu.matmul %63, %62, %cst_24 {dimension_numbers = #tpu.dot_dimension_numbers<[2], [1], [1], [2], [0, 0, 0, 1, 1, 2], [0], [0]>} : vector<2x16x16xf32>, vector<2x16x32xf32>, vector<2x16x32xf32> -> vector<2x16x32xf32>
    "tpu.trace_stop"() : () -> ()
    %65 = vector.extract_strided_slice %34 {offsets = [0, 0, 288], sizes = [2, 16, 32], strides = [1, 1, 1]} : vector<2x16x384xf32> to vector<2x16x32xf32>
    %66 = vector.extract_strided_slice %61 {offsets = [2, 0, 0], sizes = [2, 16, 16], strides = [1, 1, 1]} : vector<8x16x16xf32> to vector<2x16x16xf32>
    "tpu.trace_start"() <{level = 10 : i32, message = "bqk,bkd->bqd"}> : () -> ()
    %cst_25 = arith.constant dense<0.000000e+00> : vector<2x16x32xf32>
    %67 = tpu.matmul %66, %65, %cst_25 {dimension_numbers = #tpu.dot_dimension_numbers<[2], [1], [1], [2], [0, 0, 0, 1, 1, 2], [0], [0]>} : vector<2x16x16xf32>, vector<2x16x32xf32>, vector<2x16x32xf32> -> vector<2x16x32xf32>
    "tpu.trace_stop"() : () -> ()
    %68 = vector.extract_strided_slice %34 {offsets = [0, 0, 320], sizes = [2, 16, 32], strides = [1, 1, 1]} : vector<2x16x384xf32> to vector<2x16x32xf32>
    %69 = vector.extract_strided_slice %61 {offsets = [4, 0, 0], sizes = [2, 16, 16], strides = [1, 1, 1]} : vector<8x16x16xf32> to vector<2x16x16xf32>
    "tpu.trace_start"() <{level = 10 : i32, message = "bqk,bkd->bqd"}> : () -> ()
    %cst_26 = arith.constant dense<0.000000e+00> : vector<2x16x32xf32>
    %70 = tpu.matmul %69, %68, %cst_26 {dimension_numbers = #tpu.dot_dimension_numbers<[2], [1], [1], [2], [0, 0, 0, 1, 1, 2], [0], [0]>} : vector<2x16x16xf32>, vector<2x16x32xf32>, vector<2x16x32xf32> -> vector<2x16x32xf32>
    "tpu.trace_stop"() : () -> ()
    %71 = vector.extract_strided_slice %34 {offsets = [0, 0, 352], sizes = [2, 16, 32], strides = [1, 1, 1]} : vector<2x16x384xf32> to vector<2x16x32xf32>
    %72 = vector.extract_strided_slice %61 {offsets = [6, 0, 0], sizes = [2, 16, 16], strides = [1, 1, 1]} : vector<8x16x16xf32> to vector<2x16x16xf32>
    "tpu.trace_start"() <{level = 10 : i32, message = "bqk,bkd->bqd"}> : () -> ()
    %cst_27 = arith.constant dense<0.000000e+00> : vector<2x16x32xf32>
    %73 = tpu.matmul %72, %71, %cst_27 {dimension_numbers = #tpu.dot_dimension_numbers<[2], [1], [1], [2], [0, 0, 0, 1, 1, 2], [0], [0]>} : vector<2x16x16xf32>, vector<2x16x32xf32>, vector<2x16x32xf32> -> vector<2x16x32xf32>
    "tpu.trace_stop"() : () -> ()
    %74 = tpu.concatenate %64, %67, %70, %73 in 2 : vector<2x16x32xf32>, vector<2x16x32xf32>, vector<2x16x32xf32>, vector<2x16x32xf32> -> vector<2x16x128xf32>
    %75 = vector.shape_cast %74 : vector<2x16x128xf32> to vector<32x128xf32>
    %76 = arith.truncf %75 : vector<32x128xf32> to vector<32x128xbf16>
    %c0_28 = arith.constant 0 : index
    %c0_29 = arith.constant 0 : index
    %c0_30 = arith.constant 0 : index
    %77 = vector.load %arg6[%c0_28, %c0_29, %c0_30] : memref<1x128x128xbf16, #tpu.memory_space<vmem>>, vector<1x128x128xbf16>
    %78 = vector.shape_cast %77 : vector<1x128x128xbf16> to vector<128x128xbf16>
    %cst_31 = arith.constant dense<0.000000e+00> : vector<32x128xf32>
    %79 = tpu.matmul %76, %78, %cst_31 {dimension_numbers = #tpu.dot_dimension_numbers<[1], [0], [0], [1], [0, 0, 1, 1], [], []>} : vector<32x128xbf16>, vector<128x128xbf16>, vector<32x128xf32> -> vector<32x128xf32>
    %c0_32 = arith.constant 0 : index
    %c0_33 = arith.constant 0 : index
    %c0_34 = arith.constant 0 : index
    %80 = vector.load %arg7[%c0_32, %c0_33, %c0_34] : memref<1x1x128xf32, #tpu.memory_space<vmem>>, vector<1x1x128xf32>
    %81 = vector.shape_cast %80 : vector<1x1x128xf32> to vector<1x128xf32>
    %82 = vector.broadcast %81 : vector<1x128xf32> to vector<32x128xf32>
    %83 = arith.addf %79, %82 : vector<32x128xf32>
    %84 = arith.addf %3, %83 : vector<32x128xf32>
    %c0_35 = arith.constant 0 : index
    %c0_36 = arith.constant 0 : index
    %c0_37 = arith.constant 0 : index
    %85 = vector.load %arg8[%c0_35, %c0_36, %c0_37] : memref<1x1x128xf32, #tpu.memory_space<vmem>>, vector<1x1x128xf32>
    %86 = vector.shape_cast %85 : vector<1x1x128xf32> to vector<1x128xf32>
    %c0_38 = arith.constant 0 : index
    %c0_39 = arith.constant 0 : index
    %c0_40 = arith.constant 0 : index
    %87 = vector.load %arg9[%c0_38, %c0_39, %c0_40] : memref<1x1x128xf32, #tpu.memory_space<vmem>>, vector<1x1x128xf32>
    %88 = vector.shape_cast %87 : vector<1x1x128xf32> to vector<1x128xf32>
    %cst_41 = arith.constant dense<0.000000e+00> : vector<32xf32>
    %89 = vector.multi_reduction <add>, %84, %cst_41 [1] : vector<32x128xf32> to vector<32xf32>
    %90 = vector.shape_cast %89 : vector<32xf32> to vector<32x1xf32>
    %cst_42 = arith.constant 1.280000e+02 : f32
    %91 = vector.broadcast %cst_42 : f32 to vector<32x1xf32>
    %92 = arith.divf %90, %91 : vector<32x1xf32>
    %93 = vector.broadcast %92 : vector<32x1xf32> to vector<32x128xf32>
    %94 = arith.subf %84, %93 : vector<32x128xf32>
    %95 = arith.mulf %94, %94 : vector<32x128xf32>
    %cst_43 = arith.constant dense<0.000000e+00> : vector<32xf32>
    %96 = vector.multi_reduction <add>, %95, %cst_43 [1] : vector<32x128xf32> to vector<32xf32>
    %97 = vector.shape_cast %96 : vector<32xf32> to vector<32x1xf32>
    %cst_44 = arith.constant 1.280000e+02 : f32
    %98 = vector.broadcast %cst_44 : f32 to vector<32x1xf32>
    %99 = arith.divf %97, %98 : vector<32x1xf32>
    %100 = vector.broadcast %92 : vector<32x1xf32> to vector<32x128xf32>
    %101 = arith.subf %84, %100 : vector<32x128xf32>
    %cst_45 = arith.constant 9.99999974E-6 : f32
    %102 = vector.broadcast %cst_45 : f32 to vector<32x1xf32>
    %103 = arith.addf %99, %102 : vector<32x1xf32>
    %104 = math.rsqrt %103 : vector<32x1xf32>
    %105 = vector.broadcast %104 : vector<32x1xf32> to vector<32x128xf32>
    %106 = arith.mulf %101, %105 : vector<32x128xf32>
    %107 = vector.broadcast %86 : vector<1x128xf32> to vector<32x128xf32>
    %108 = arith.mulf %106, %107 : vector<32x128xf32>
    %109 = vector.broadcast %88 : vector<1x128xf32> to vector<32x128xf32>
    %110 = arith.addf %108, %109 : vector<32x128xf32>
    %111 = arith.truncf %110 : vector<32x128xf32> to vector<32x128xbf16>
    %c0_46 = arith.constant 0 : index
    %c0_47 = arith.constant 0 : index
    %c0_48 = arith.constant 0 : index
    %112 = vector.load %arg10[%c0_46, %c0_47, %c0_48] : memref<1x128x512xbf16, #tpu.memory_space<vmem>>, vector<1x128x512xbf16>
    %113 = vector.shape_cast %112 : vector<1x128x512xbf16> to vector<128x512xbf16>
    %cst_49 = arith.constant dense<0.000000e+00> : vector<32x512xf32>
    %114 = tpu.matmul %111, %113, %cst_49 {dimension_numbers = #tpu.dot_dimension_numbers<[1], [0], [0], [1], [0, 0, 1, 1], [], []>} : vector<32x128xbf16>, vector<128x512xbf16>, vector<32x512xf32> -> vector<32x512xf32>
    %c0_50 = arith.constant 0 : index
    %c0_51 = arith.constant 0 : index
    %c0_52 = arith.constant 0 : index
    %115 = vector.load %arg11[%c0_50, %c0_51, %c0_52] : memref<1x1x512xf32, #tpu.memory_space<vmem>>, vector<1x1x512xf32>
    %116 = vector.shape_cast %115 : vector<1x1x512xf32> to vector<1x512xf32>
    %117 = vector.broadcast %116 : vector<1x512xf32> to vector<32x512xf32>
    %118 = arith.addf %114, %117 : vector<32x512xf32>
    %cst_53 = arith.constant 0.000000e+00 : f32
    %119 = vector.broadcast %cst_53 : f32 to vector<32x512xf32>
    %120 = arith.maximumf %118, %119 : vector<32x512xf32>
    %121 = arith.truncf %120 : vector<32x512xf32> to vector<32x512xbf16>
    %c0_54 = arith.constant 0 : index
    %c0_55 = arith.constant 0 : index
    %c0_56 = arith.constant 0 : index
    %122 = vector.load %arg12[%c0_54, %c0_55, %c0_56] : memref<1x512x128xbf16, #tpu.memory_space<vmem>>, vector<1x512x128xbf16>
    %123 = vector.shape_cast %122 : vector<1x512x128xbf16> to vector<512x128xbf16>
    %cst_57 = arith.constant dense<0.000000e+00> : vector<32x128xf32>
    %124 = tpu.matmul %121, %123, %cst_57 {dimension_numbers = #tpu.dot_dimension_numbers<[1], [0], [0], [1], [0, 0, 1, 1], [], []>} : vector<32x512xbf16>, vector<512x128xbf16>, vector<32x128xf32> -> vector<32x128xf32>
    %125 = arith.addf %84, %124 : vector<32x128xf32>
    %c0_58 = arith.constant 0 : index
    %c0_59 = arith.constant 0 : index
    %c0_60 = arith.constant 0 : index
    %126 = vector.load %arg13[%c0_58, %c0_59, %c0_60] : memref<1x1x128xf32, #tpu.memory_space<vmem>>, vector<1x1x128xf32>
    %127 = vector.shape_cast %126 : vector<1x1x128xf32> to vector<1x128xf32>
    %128 = vector.broadcast %127 : vector<1x128xf32> to vector<32x128xf32>
    %129 = arith.addf %125, %128 : vector<32x128xf32>
    %c0_61 = arith.constant 0 : index
    %c0_62 = arith.constant 0 : index
    %130 = vector.load %arg19[%c0_61, %c0_62] : memref<32x128xf32, #tpu.memory_space<vmem>>, vector<32x128xf32>
    tpu.vector_store %arg19[%c0_61, %c0_62], %129 {strides = array<i32>} : memref<32x128xf32, #tpu.memory_space<vmem>>, vector<32x128xf32>,
    %c1_i32 = arith.constant 1 : i32
    %131 = arith.cmpi eq, %arg0, %c1_i32 : i32
    %132 = arith.extui %131 : i1 to i32
    %c0_i32_63 = arith.constant 0 : i32
    %133 = arith.cmpi ne, %132, %c0_i32_63 : i32
    scf.if %133 {
      %c0_64 = arith.constant 0 : index
      %c0_65 = arith.constant 0 : index
      %134 = vector.load %arg14[%c0_64, %c0_65] : memref<1x128xf32, #tpu.memory_space<vmem>>, vector<1x128xf32>
      %c0_66 = arith.constant 0 : index
      %c0_67 = arith.constant 0 : index
      %135 = vector.load %arg15[%c0_66, %c0_67] : memref<1x128xf32, #tpu.memory_space<vmem>>, vector<1x128xf32>
      %cst_68 = arith.constant dense<0.000000e+00> : vector<32xf32>
      %136 = vector.multi_reduction <add>, %129, %cst_68 [1] : vector<32x128xf32> to vector<32xf32>
      %137 = vector.shape_cast %136 : vector<32xf32> to vector<32x1xf32>
      %cst_69 = arith.constant 1.280000e+02 : f32
      %138 = vector.broadcast %cst_69 : f32 to vector<32x1xf32>
      %139 = arith.divf %137, %138 : vector<32x1xf32>
      %140 = vector.broadcast %139 : vector<32x1xf32> to vector<32x128xf32>
      %141 = arith.subf %129, %140 : vector<32x128xf32>
      %142 = arith.mulf %141, %141 : vector<32x128xf32>
      %cst_70 = arith.constant dense<0.000000e+00> : vector<32xf32>
      %143 = vector.multi_reduction <add>, %142, %cst_70 [1] : vector<32x128xf32> to vector<32xf32>
      %144 = vector.shape_cast %143 : vector<32xf32> to vector<32x1xf32>
      %cst_71 = arith.constant 1.280000e+02 : f32
      %145 = vector.broadcast %cst_71 : f32 to vector<32x1xf32>
      %146 = arith.divf %144, %145 : vector<32x1xf32>
      %147 = vector.broadcast %139 : vector<32x1xf32> to vector<32x128xf32>
      %148 = arith.subf %129, %147 : vector<32x128xf32>
      %cst_72 = arith.constant 9.99999974E-6 : f32
      %149 = vector.broadcast %cst_72 : f32 to vector<32x1xf32>
      %150 = arith.addf %146, %149 : vector<32x1xf32>
      %151 = math.rsqrt %150 : vector<32x1xf32>
      %152 = vector.broadcast %151 : vector<32x1xf32> to vector<32x128xf32>
      %153 = arith.mulf %148, %152 : vector<32x128xf32>
      %154 = vector.broadcast %134 : vector<1x128xf32> to vector<32x128xf32>
      %155 = arith.mulf %153, %154 : vector<32x128xf32>
      %156 = vector.broadcast %135 : vector<1x128xf32> to vector<32x128xf32>
      %157 = arith.addf %155, %156 : vector<32x128xf32>
      %158 = arith.truncf %157 : vector<32x128xf32> to vector<32x128xbf16>
      %c0_73 = arith.constant 0 : index
      %c0_74 = arith.constant 0 : index
      %159 = vector.load %arg16[%c0_73, %c0_74] : memref<128x128xbf16, #tpu.memory_space<vmem>>, vector<128x128xbf16>
      %cst_75 = arith.constant dense<0.000000e+00> : vector<32x128xf32>
      %160 = tpu.matmul %158, %159, %cst_75 {dimension_numbers = #tpu.dot_dimension_numbers<[1], [0], [0], [1], [0, 0, 1, 1], [], []>} : vector<32x128xbf16>, vector<128x128xbf16>, vector<32x128xf32> -> vector<32x128xf32>
      %c0_76 = arith.constant 0 : index
      %c0_77 = arith.constant 0 : index
      %161 = vector.load %arg17[%c0_76, %c0_77] : memref<1x128xf32, #tpu.memory_space<vmem>>, vector<1x128xf32>
      %162 = vector.broadcast %161 : vector<1x128xf32> to vector<32x128xf32>
      %163 = arith.addf %160, %162 : vector<32x128xf32>
      %c0_78 = arith.constant 0 : index
      %c0_79 = arith.constant 0 : index
      %164 = vector.load %arg18[%c0_78, %c0_79] : memref<32x128xf32, #tpu.memory_space<vmem>>, vector<32x128xf32>
      tpu.vector_store %arg18[%c0_78, %c0_79], %163 {strides = array<i32>} : memref<32x128xf32, #tpu.memory_space<vmem>>, vector<32x128xf32>,
    } else {
    }
    return
  }
  func.func @transform_0(%arg0: i32) -> (i32, i32) {
    %c0_i32 = arith.constant 0 : i32
    %c0_i32_0 = arith.constant 0 : i32
    %c0_i32_1 = arith.constant 0 : i32
    return %c0_i32, %c0_i32_0 : i32, i32
  }
  func.func @transform_1(%arg0: i32) -> (i32, i32) {
    %c0_i32 = arith.constant 0 : i32
    %c0_i32_0 = arith.constant 0 : i32
    %c0_i32_1 = arith.constant 0 : i32
    return %c0_i32, %c0_i32_0 : i32, i32
  }
  func.func @transform_2(%arg0: i32) -> (i32, i32, i32) {
    %c0_i32 = arith.constant 0 : i32
    %c0_i32_0 = arith.constant 0 : i32
    %c0_i32_1 = arith.constant 0 : i32
    return %arg0, %c0_i32, %c0_i32_0 : i32, i32, i32
  }
  func.func @transform_3(%arg0: i32) -> (i32, i32, i32) {
    %c0_i32 = arith.constant 0 : i32
    %c0_i32_0 = arith.constant 0 : i32
    %c0_i32_1 = arith.constant 0 : i32
    return %arg0, %c0_i32, %c0_i32_0 : i32, i32, i32
  }
  func.func @transform_4(%arg0: i32) -> (i32, i32, i32) {
    %c0_i32 = arith.constant 0 : i32
    %c0_i32_0 = arith.constant 0 : i32
    %c0_i32_1 = arith.constant 0 : i32
    return %arg0, %c0_i32, %c0_i32_0 : i32, i32, i32
  }
  func.func @transform_5(%arg0: i32) -> (i32, i32, i32) {
    %c0_i32 = arith.constant 0 : i32
    %c0_i32_0 = arith.constant 0 : i32
    %c0_i32_1 = arith.constant 0 : i32
    return %arg0, %c0_i32, %c0_i32_0 : i32, i32, i32
  }
  func.func @transform_6(%arg0: i32) -> (i32, i32, i32) {
    %c0_i32 = arith.constant 0 : i32
    %c0_i32_0 = arith.constant 0 : i32
    %c0_i32_1 = arith.constant 0 : i32
    return %arg0, %c0_i32, %c0_i32_0 : i32, i32, i32
  }
  func.func @transform_7(%arg0: i32) -> (i32, i32, i32) {
    %c0_i32 = arith.constant 0 : i32
    %c0_i32_0 = arith.constant 0 : i32
    %c0_i32_1 = arith.constant 0 : i32
    return %arg0, %c0_i32, %c0_i32_0 : i32, i32, i32
  }
  func.func @transform_8(%arg0: i32) -> (i32, i32, i32) {
    %c0_i32 = arith.constant 0 : i32
    %c0_i32_0 = arith.constant 0 : i32
    %c0_i32_1 = arith.constant 0 : i32
    return %arg0, %c0_i32, %c0_i32_0 : i32, i32, i32
  }
  func.func @transform_9(%arg0: i32) -> (i32, i32, i32) {
    %c0_i32 = arith.constant 0 : i32
    %c0_i32_0 = arith.constant 0 : i32
    %c0_i32_1 = arith.constant 0 : i32
    return %arg0, %c0_i32, %c0_i32_0 : i32, i32, i32
  }
  func.func @transform_10(%arg0: i32) -> (i32, i32, i32) {
    %c0_i32 = arith.constant 0 : i32
    %c0_i32_0 = arith.constant 0 : i32
    %c0_i32_1 = arith.constant 0 : i32
    return %arg0, %c0_i32, %c0_i32_0 : i32, i32, i32
  }
  func.func @transform_11(%arg0: i32) -> (i32, i32, i32) {
    %c0_i32 = arith.constant 0 : i32
    %c0_i32_0 = arith.constant 0 : i32
    %c0_i32_1 = arith.constant 0 : i32
    return %arg0, %c0_i32, %c0_i32_0 : i32, i32, i32
  }
  func.func @transform_12(%arg0: i32) -> (i32, i32, i32) {
    %c0_i32 = arith.constant 0 : i32
    %c0_i32_0 = arith.constant 0 : i32
    %c0_i32_1 = arith.constant 0 : i32
    return %arg0, %c0_i32, %c0_i32_0 : i32, i32, i32
  }
  func.func @transform_13(%arg0: i32) -> (i32, i32) {
    %c0_i32 = arith.constant 0 : i32
    %c0_i32_0 = arith.constant 0 : i32
    %c0_i32_1 = arith.constant 0 : i32
    return %c0_i32, %c0_i32_0 : i32, i32
  }
  func.func @transform_14(%arg0: i32) -> (i32, i32) {
    %c0_i32 = arith.constant 0 : i32
    %c0_i32_0 = arith.constant 0 : i32
    %c0_i32_1 = arith.constant 0 : i32
    return %c0_i32, %c0_i32_0 : i32, i32
  }
  func.func @transform_15(%arg0: i32) -> (i32, i32) {
    %c0_i32 = arith.constant 0 : i32
    %c0_i32_0 = arith.constant 0 : i32
    %c0_i32_1 = arith.constant 0 : i32
    return %c0_i32, %c0_i32_0 : i32, i32
  }
  func.func @transform_16(%arg0: i32) -> (i32, i32) {
    %c0_i32 = arith.constant 0 : i32
    %c0_i32_0 = arith.constant 0 : i32
    %c0_i32_1 = arith.constant 0 : i32
    return %c0_i32, %c0_i32_0 : i32, i32
  }
  func.func @transform_17(%arg0: i32) -> (i32, i32) {
    %c0_i32 = arith.constant 0 : i32
    %c0_i32_0 = arith.constant 0 : i32
    %c0_i32_1 = arith.constant 0 : i32
    return %c0_i32, %c0_i32_0 : i32, i32
  }
}

</mosaic_0001>

<bundles_post_ra>
// kernel: tpu_custom_call.1
= control target key start
LH: loop header
LB: loop body
LE: loop exit
PB: predicated region body
PF: predicated region fallthrough
CT: control target
= control target key end

     0   :  { %s6350_s0 = inlined_call_operand.hbm [shape: f32[32,128], index: 0, kind: input, shape index: {}]   ;;  %s6351_s1 = inlined_call_operand.hbm [shape: f32[16,16], index: 1, kind: input, shape index: {}]   ;;  %s6352_s2 = inlined_call_operand.vmem [shape: f32[2,1,128], index: 2, kind: input, shape index: {}]   ;;  %s6353_s3 = inlined_call_operand.vmem [shape: f32[2,1,128], index: 3, kind: input, shape index: {}]   ;;  %s6354_s4 = inlined_call_operand.hbm [shape: bf16[2,128,384], index: 4, kind: input, shape index: {}]   ;;  %s6355_s5 = inlined_call_operand.hbm [shape: bf16[2,128,128], index: 5, kind: input, shape index: {}]   ;;  %s6356_s6 = inlined_call_operand.vmem [shape: f32[2,1,128], index: 6, kind: input, shape index: {}]   ;;  %s6357_s7 = inlined_call_operand.vmem [shape: f32[2,1,128], index: 7, kind: input, shape index: {}]   ;;  %s6358_s8 = inlined_call_operand.hbm [shape: f32[2,1,128], index: 8, kind: input, shape index: {}]   ;;  %s6359_s9 = inlined_call_operand.hbm [shape: bf16[2,128,512], index: 9, kind: input, shape index: {}]   ;;  %s6360_s10 = inlined_call_operand.vmem [shape: f32[2,1,512], index: 10, kind: input, shape index: {}]   ;;  %s6361_s11 = inlined_call_operand.hbm [shape: bf16[2,512,128], index: 11, kind: input, shape index: {}]   ;;  %s6362_s12 = inlined_call_operand.vmem [shape: f32[2,1,128], index: 12, kind: input, shape index: {}]   ;;  %s6363_s13 = inlined_call_operand.vmem [shape: f32[1,128], index: 13, kind: input, shape index: {}]   ;;  %s6364_s14 = inlined_call_operand.vmem [shape: f32[1,128], index: 14, kind: input, shape index: {}]   ;;  %s6365_s15 = inlined_call_operand.hbm [shape: bf16[128,128], index: 15, kind: input, shape index: {}]   ;;  %s6366_s16 = inlined_call_operand.vmem [shape: f32[1,128], index: 16, kind: input, shape index: {}]   ;;  %s6367_s17 = inlined_call_operand.hbm [shape: f32[32,128], index: 17, kind: output, shape index: {}]  }
   0x1   :  { %6380 = sst [smem:[#allocation23_spill]] %s6350_s0 }
   0x2   :  { %6381 = sst [smem:[#allocation24_spill]] %s6351_s1 }
   0x3   :  { %6382 = sst [smem:[#allocation25_spill]] %s6353_s3 }
   0x4   :  { %6383 = sst [smem:[#allocation26_spill]] %s6354_s4 }
   0x5   :  { %6384 = sst [smem:[#allocation27_spill]] %s6355_s5 }
   0x6   :  { %6385 = sst [smem:[#allocation28_spill]] %s6356_s6 }
   0x7   :  { %6386 = sst [smem:[#allocation29_spill]] %s6357_s7 }
   0x8   :  { %6387 = sst [smem:[#allocation30_spill]] %s6358_s8 }
   0x9   :  { %6388 = sst [smem:[#allocation31_spill]] %s6359_s9 }
   0xa   :  { %6389 = sst [smem:[#allocation32_spill]] %s6360_s10 }
   0xb   :  { %6390 = sst [smem:[#allocation33_spill]] %s6361_s11 }
   0xc   :  { %6391 = sst [smem:[#allocation34_spill]] %s6362_s12 }
   0xd   :  { %6392 = sst [smem:[#allocation35_spill]] %s6363_s13 }
   0xe   :  { %6393 = sst [smem:[#allocation36_spill]] %s6364_s14 }
   0xf   :  { %6394 = sst [smem:[#allocation37_spill]] %s6366_s16 }
  0x10   :  { %6395 = sst [smem:[#allocation38_spill]] %s6367_s17 }
  0x11   :  { %22 = vsyncpa [#allocation4], 0 }
  0x12   :  { %23 = vsyncpa [#allocation7], 0 }
  0x13   :  { %24 = vsyncpa [#allocation5], 0  ;;  %s5455_s24 = smov 0   ;;  %s5457_s25 = smov 0  }
  0x14   :  { %s5459_s26 = smov 0   ;;  %s5461_s27 = smov 0  }
  0x15 LB: > { %6396 = sst [smem:[#allocation20_spill]] %s5336_s26  ;;  %s5474_s28 = sadd.s32 4294967295, %s5340_s27   ;;  %s5340_s27 = sphi %s5461_s27, %s6442_s27   ;;  %s5336_s26 = sphi %s5459_s26, %s6447_s26   ;;  %s5332_s25 = sphi %s5457_s25, %s6446_s25   ;;  %s5328_s24 = sphi %s5455_s24, %s6445_s24  }
  0x16   : > { %s5477_s29 = sadd.s32 1, %s5340_s27   ;;  %s131_s30 = sadd.s32 1, %s5336_s26 }
  0x17   : > { %6397 = sst [smem:[#allocation21_spill]] %s5477_s29  ;;  %s128_s0 = ssub.s32 %s5340_s27, %s5477_s29 }
  0x18   : > { %p129_p0 = scmp.eq.s32.totalorder %s128_s0, 0  ;;  %p138_p1 = scmp.ne.s32.totalorder %s5336_s26, %s5332_s25 }
  0x19   : > { %p139_p2 = scmp.eq.s32.totalorder %s5340_s27, 0  ;;  %p144_p3 = scmp.ne.s32.totalorder %s5332_s25, %s5328_s24 }
  0x1a   : > { %s5487_s18 = scalar_select %p129_p0, %s5336_s26, %s131_s30  }
  0x1b   : > { %p5489_p4 = por %p139_p2, %p138_p1  ;;  %p6368_p5 = scmp.eq.s32.totalorder %s5474_s28, 0 }
  0x1c   : > { %6398 = sst [smem:[#allocation22_spill]] %s5487_s18  ;;  %p4168_p6 = scmp.ge.s32.totalorder %s5340_s27, 1 }
  0x1d   : > { %p468_p7 = scmp.lt.s32.totalorder %s5340_s27, 3  ;;  %p5498_p8 = por %p6368_p5, %p144_p3 }
  0x1e   : > { %s5342_s21 = smov [#allocation3]   ;;  %p4742_p13 = scmp.lt.s32.totalorder %s5340_s27, 2 }
  0x1f   : > { %s6400_s1 = scalar_select %p5498_p8, 1, 0 }
  0x20   : > { %p5503_p10 = pnand %p4168_p6, %p468_p7  ;;  %s480_s22 = sshll.u32 %s5342_s21, 4  ;;  %s481_s22 = int_to_ptr.vmem [resolvable:$true] %s480_s22 }
  0x21   : > { %s541_s24 = sand.u32 1, %s5340_s27   ;;  %s5518_s0 = sand.u32 1, %s5336_s26  }
  0x22   : > { %s6401_s20 = scalar_select %p5503_p10, 1, 0 }
  0x23   : > { %p4713_p11 = pneg %p5503_p10  ;;  %p5522_p0 = pnand %p4742_p13, %p5489_p4 }
  0x24   : > { %s5059_s21 = scalar_lea.vmem %s481_s22, 512  ;;  %p5067_p7 = scmp.lt.s32.totalorder %s481_s22, %s481_s22 }
  0x25   : > { %p5511_p12 = pnand %p4713_p11, %p6368_p5  ;;  %p5060_p2 = scmp.ne.s32.totalorder %s481_s22, %s5059_s21 }
  0x26   : > { %p5068_p11 = scmp.lt.s32.totalorder %s5059_s21, %s5059_s21 }
  0x27   : > { %s6402_s23 = scalar_select %p5511_p12, 1, 0 }
  0x28   : > { %p6372_p1 = pneg %p5511_p12  ;;  %p5069_p9 = por %p5068_p11, %p5067_p7 }
  0x2a   : > { %p5062_p3 = pnand %p5060_p2, %p6372_p1 }
  0x2c   : > { %p5063_p6 = pneg %p5062_p3 }
  0x2e   : > { %p5070_p5 = pnand %p5069_p9, %p5063_p6 }
  0x30   : > { %5073 = shalt.err (!%p5070_p5)
}
  0x31   : > { %s6377_s18 = smov 128   ;;  %s6378_s19 = smov 8  }
  0x32   : > { %s6404_s17 = sld [smem:[#allocation23_spill]]  ;;  %s4684_s16 = smul.u32 192, %s5518_s0 }
  0x33   : > { %s4685_s14 = smul.u32 3072, %s5340_s27  ;;  %s6405_s4 = sld [smem:[#allocation26_spill]] }
  0x34   : > { %s545_s12 = scalar_lea.vmem [#allocation8], %s4684_s16  ;;  %s5548_s6 = scalar_lea.sflag [#allocation4], %s541_s24 }
  0x35   : > { %s552_s7 = sshll.u32 %s545_s12, 4  ;;  %p5554_p5 = pneg %p5522_p0  ;;  %s5546_s7 = int_to_ptr.vmem [resolvable:$true] %s552_s7 }
  0x38   : > { %4716 = dma.hbm_to_vmem [thread:$0]  (!%p5511_p12), %s6404_s17, 512, %s481_s22, [#allocation4], %s6377_s18, %s6377_s18, %s6378_s19  }
  0x39   : > { %s5544_s10 = scalar_lea.hbm %s6405_s4, %s4685_s14  ;;  %s5079_s16 = scalar_lea.hbm %s6405_s4, 6144 }
  0x3a   : > { %s5074_s3 = scalar_lea.hbm %s5544_s10, 3072  ;;  %p5080_p2 = scmp.lt.s32.totalorder %s5544_s10, %s6405_s4 }
  0x3b   : > { %p5075_p4 = scmp.ne.s32.totalorder %s5544_s10, %s5074_s3  ;;  %p5081_p3 = scmp.lt.s32.totalorder %s5079_s16, %s5074_s3 }
  0x3d   : > { %p5077_p9 = pnand %p5554_p5, %p5075_p4  ;;  %p5082_p6 = por %p5081_p3, %p5080_p2 }
  0x3f   : > { %p5078_p13 = pneg %p5077_p9 }
  0x41   : > { %p5083_p7 = pnand %p5082_p6, %p5078_p13 }
  0x43   : > { %5086 = shalt.err (!%p5083_p7)
}
  0x44   : > { %s5087_s29 = scalar_lea.vmem %s5546_s7, 3072  ;;  %s5345_s22 = smov [#allocation8]  }
  0x45   : > { %p5088_p11 = scmp.ne.s32.totalorder %s5546_s7, %s5087_s29  ;;  %s5092_s24 = sshll.u32 %s5345_s22, 4  ;;  %s5093_s24 = int_to_ptr.vmem [resolvable:$false] %s5092_s24 }
  0x46   : > { %s5094_s21 = scalar_lea.vmem %s5093_s24, 6144  ;;  %p5095_p1 = scmp.lt.s32.totalorder %s5546_s7, %s5093_s24 }
  0x47   : > { %p5090_p4 = pnand %p5088_p11, %p5554_p5  ;;  %p5096_p8 = scmp.lt.s32.totalorder %s5094_s21, %s5087_s29 }
  0x49   : > { %p5091_p9 = pneg %p5090_p4  ;;  %p5097_p10 = por %p5096_p8, %p5095_p1 }
  0x4b   : > { %p5098_p12 = pnand %p5097_p10, %p5091_p9 }
  0x4d   : > { %5101 = shalt.err (!%p5098_p12)
}
  0x4e   : > { %s5346_s3 = smov 192   ;;  %s5347_s13 = smov 12  }
  0x4f   : > { %4726 = dma.hbm_to_vmem [thread:$0]  (!%p5522_p0), %s5544_s10, 3072, %s5546_s7, %s5548_s6, %s5346_s3, %s5346_s3, %s5347_s13  }
  0x50   : > { %s4174_s14 = sshll.u32 %s5518_s0, 6  ;;  %s4359_s16 = sshll.u32 %s5340_s27, 10 }
  0x51   : > { %s6407_s5 = sld [smem:[#allocation27_spill]]  ;;  %s566_s22 = scalar_lea.vmem [#allocation9], %s4174_s14 }
  0x52   : > { %s573_s24 = sshll.u32 %s566_s22, 4  ;;  %s4177_s21 = sshll.u32 %s5340_s27, 4  ;;  %s5584_s24 = int_to_ptr.vmem [resolvable:$true] %s573_s24 }
  0x57   : > { %s5582_s29 = scalar_lea.hbm %s6407_s5, %s4359_s16  ;;  %s5107_s3 = scalar_lea.hbm %s6407_s5, 2048 }
  0x58   : > { %s5102_s18 = scalar_lea.hbm %s5582_s29, 1024  ;;  %p5108_p1 = scmp.lt.s32.totalorder %s5582_s29, %s6407_s5 }
  0x59   : > { %p5103_p8 = scmp.ne.s32.totalorder %s5582_s29, %s5102_s18  ;;  %p5109_p13 = scmp.lt.s32.totalorder %s5107_s3, %s5102_s18 }
  0x5b   : > { %p5105_p10 = pnand %p5103_p8, %p5554_p5  ;;  %p5110_p2 = por %p5109_p13, %p5108_p1 }
  0x5d   : > { %p5106_p12 = pneg %p5105_p10 }
  0x5f   : > { %p5111_p3 = pnand %p5110_p2, %p5106_p12 }
  0x61   : > { %5114 = shalt.err (!%p5111_p3)
}
  0x62   : > { %s5115_s14 = scalar_lea.vmem %s5584_s24, 1024  ;;  %s5348_s12 = smov [#allocation9]  }
  0x63   : > { %p5116_p6 = scmp.ne.s32.totalorder %s5584_s24, %s5115_s14  ;;  %s5120_s26 = sshll.u32 %s5348_s12, 4  ;;  %s5121_s26 = int_to_ptr.vmem [resolvable:$false] %s5120_s26 }
  0x64   : > { %s5122_s22 = scalar_lea.vmem %s5121_s26, 2048  ;;  %p5123_p4 = scmp.lt.s32.totalorder %s5584_s24, %s5121_s26 }
  0x65   : > { %p5118_p7 = pnand %p5116_p6, %p5554_p5  ;;  %p5124_p9 = scmp.lt.s32.totalorder %s5122_s22, %s5115_s14 }
  0x67   : > { %p5119_p11 = pneg %p5118_p7  ;;  %p5125_p8 = por %p5124_p9, %p5123_p4 }
  0x69   : > { %p5126_p10 = pnand %p5125_p8, %p5119_p11 }
  0x6b   : > { %5129 = shalt.err (!%p5126_p10)
}
  0x6c   : > { %s5349_s18 = smov 64   ;;  %s5350_s7 = smov 4  }
  0x6d   : > { %4729 = dma.hbm_to_vmem [thread:$0]  (!%p5522_p0), %s5582_s29, 1024, %s5584_s24, %s5548_s6, %s5349_s18, %s5349_s18, %s5350_s7  }
  0x6e   : > { %s6408_s8 = sld [smem:[#allocation30_spill]]  ;;  %s598_s16 = scalar_lea.vmem [#allocation10], %s5518_s0 }
  0x6f   : > { %s605_s14 = sshll.u32 %s598_s16, 4  ;;  %s606_s14 = int_to_ptr.vmem [resolvable:$true] %s605_s14 }
  0x74   : > { %s603_s13 = scalar_lea.hbm %s6408_s8, %s4177_s21  ;;  %s5135_s19 = scalar_lea.hbm %s6408_s8, 32 }
  0x75   : > { %s5130_s12 = scalar_lea.hbm %s603_s13, 16  ;;  %p5136_p2 = scmp.lt.s32.totalorder %s603_s13, %s6408_s8 }
  0x76   : > { %p5131_p12 = scmp.ne.s32.totalorder %s603_s13, %s5130_s12  ;;  %p5137_p3 = scmp.lt.s32.totalorder %s5135_s19, %s5130_s12 }
  0x78   : > { %p5133_p1 = pnand %p5131_p12, %p5554_p5  ;;  %p5138_p6 = por %p5137_p3, %p5136_p2 }
  0x7a   : > { %p5134_p13 = pneg %p5133_p1 }
  0x7c   : > { %p5139_p7 = pnand %p5138_p6, %p5134_p13 }
  0x7e   : > { %5142 = shalt.err (!%p5139_p7)
}
  0x7f   : > { %s5143_s29 = scalar_lea.vmem %s606_s14, 16  ;;  %s5351_s24 = smov [#allocation10]  }
  0x80   : > { %p5144_p11 = scmp.ne.s32.totalorder %s606_s14, %s5143_s29  ;;  %s5148_s21 = sshll.u32 %s5351_s24, 4  ;;  %s5149_s21 = int_to_ptr.vmem [resolvable:$false] %s5148_s21 }
  0x81   : > { %s5150_s10 = scalar_lea.vmem %s5149_s21, 32  ;;  %p5151_p8 = scmp.lt.s32.totalorder %s606_s14, %s5149_s21 }
  0x82   : > { %p5146_p4 = pnand %p5144_p11, %p5554_p5  ;;  %p5152_p10 = scmp.lt.s32.totalorder %s5150_s10, %s5143_s29 }
  0x84   : > { %p5147_p9 = pneg %p5146_p4  ;;  %p5153_p12 = por %p5152_p10, %p5151_p8 }
  0x86   : > { %p5154_p1 = pnand %p5153_p12, %p5147_p9 }
  0x88   : > { %5157 = shalt.err (!%p5154_p1)
}
  0x89   : > { %4732 = dma.hbm_to_vmem [thread:$0]  (!%p5522_p0), %s603_s13, 16, %s606_s14, %s5548_s6  }
  0x8a   : > { %s5352_s4 = smov [#allocation6]   ;;  %s4178_s19 = sshll.u32 %s5518_s0, 8 }
  0x8b   : > { %s493_s5 = sshll.u32 %s5352_s4, 4  ;;  %p6409_p2 = scmp.ne.s32.totalorder %s6402_s23, 0  ;;  %s494_s5 = int_to_ptr.vmem [resolvable:$true] %s493_s5 }
  0x8c   : > { %s5169_s3 = scalar_lea.vmem %s494_s5, 256  ;;  %p5177_p11 = scmp.lt.s32.totalorder %s494_s5, %s494_s5 }
  0x8d   : > { %p5170_p13 = scmp.ne.s32.totalorder %s494_s5, %s5169_s3  ;;  %p6410_p3 = pneg %p6409_p2 }
  0x8e   : > { %p5178_p4 = scmp.lt.s32.totalorder %s5169_s3, %s5169_s3 }
  0x8f   : > { %p5172_p6 = pnand %p5170_p13, %p6410_p3 }
  0x90   : > { %p5179_p9 = por %p5178_p4, %p5177_p11 }
  0x91   : > { %p5173_p7 = pneg %p5172_p6 }
  0x93   : > { %p5180_p8 = pnand %p5179_p9, %p5173_p7 }
  0x95   : > { %5183 = shalt.err (!%p5180_p8)
}
  0x96   : > { %s6411_s16 = smov 8   ;;  %s6412_s12 = smov 128  }
  0x97   : > { %s6413_s26 = sld [smem:[#allocation24_spill]]  ;;  %s4360_s22 = sshll.u32 %s5340_s27, 12 }
  0x98   : > { %s616_s29 = scalar_lea.vmem [#allocation11], %s4178_s19  ;;  %s6414_s9 = sld [smem:[#allocation31_spill]] }
  0x99   : > { %s623_s24 = sshll.u32 %s616_s29, 4  ;;  %s5652_s24 = int_to_ptr.vmem [resolvable:$true] %s623_s24 }
  0x9d   : > { %4719 = dma.hbm_to_vmem [thread:$0]  (!%p6409_p2), %s6413_s26, 256, %s494_s5, [#allocation7], %s6412_s12, %s6412_s12, %s6411_s16  }
  0x9e   : > { %s5650_s4 = scalar_lea.hbm %s6414_s9, %s4360_s22  ;;  %s5189_s12 = scalar_lea.hbm %s6414_s9, 8192 }
  0x9f   : > { %s5184_s3 = scalar_lea.hbm %s5650_s4, 4096  ;;  %p5190_p13 = scmp.lt.s32.totalorder %s5650_s4, %s6414_s9 }
  0xa0   : > { %p5185_p10 = scmp.ne.s32.totalorder %s5650_s4, %s5184_s3  ;;  %p5191_p3 = scmp.lt.s32.totalorder %s5189_s12, %s5184_s3 }
  0xa2   : > { %p5187_p12 = pnand %p5185_p10, %p5554_p5  ;;  %p5192_p6 = por %p5191_p3, %p5190_p13 }
  0xa4   : > { %p5188_p1 = pneg %p5187_p12 }
  0xa6   : > { %p5193_p7 = pnand %p5192_p6, %p5188_p1 }
  0xa8   : > { %5196 = shalt.err (!%p5193_p7)
}
  0xa9   : > { %s5197_s26 = scalar_lea.vmem %s5652_s24, 4096  ;;  %s5353_s29 = smov [#allocation11]  }
  0xaa   : > { %p5198_p11 = scmp.ne.s32.totalorder %s5652_s24, %s5197_s26  ;;  %s5202_s21 = sshll.u32 %s5353_s29, 4  ;;  %s5203_s21 = int_to_ptr.vmem [resolvable:$false] %s5202_s21 }
  0xab   : > { %s5204_s10 = scalar_lea.vmem %s5203_s21, 8192  ;;  %p5205_p8 = scmp.lt.s32.totalorder %s5652_s24, %s5203_s21 }
  0xac   : > { %p5200_p4 = pnand %p5198_p11, %p5554_p5  ;;  %p5206_p10 = scmp.lt.s32.totalorder %s5204_s10, %s5197_s26 }
  0xae   : > { %p5201_p9 = pneg %p5200_p4  ;;  %p5207_p12 = por %p5206_p10, %p5205_p8 }
  0xb0   : > { %p5208_p2 = pnand %p5207_p12, %p5201_p9 }
  0xb2   : > { %5211 = shalt.err (!%p5208_p2)
}
  0xb3   : > { %s5354_s3 = smov 256   ;;  %s5355_s5 = smov 16  }
  0xb4   : > { %4735 = dma.hbm_to_vmem [thread:$0]  (!%p5522_p0), %s5650_s4, 4096, %s5652_s24, %s5548_s6, %s5354_s3, %s5354_s3, %s5355_s5  }
  0xb5   : > { %s5356_s16 = smov [#allocation13]   ;;  %s6415_s11 = sld [smem:[#allocation33_spill]] }
  0xb6   : > { %s512_s12 = sshll.u32 %s5356_s16, 4  ;;  %s644_s29 = scalar_lea.vmem [#allocation12], %s4178_s19  ;;  %s513_s12 = int_to_ptr.vmem [resolvable:$true] %s512_s12 }
  0xb7   : > { %s651_s21 = sshll.u32 %s644_s29, 4  ;;  %s5223_s10 = scalar_lea.vmem %s513_s12, 1024  ;;  %s652_s21 = int_to_ptr.vmem [resolvable:$true] %s651_s21 }
  0xb8   : > { %p5224_p2 = scmp.ne.s32.totalorder %s513_s12, %s5223_s10  ;;  %p6416_p1 = scmp.ne.s32.totalorder %s6402_s23, 0 }
  0xb9   : > { %p5231_p7 = scmp.lt.s32.totalorder %s513_s12, %s513_s12  ;;  %p5232_p11 = scmp.lt.s32.totalorder %s5223_s10, %s5223_s10 }
  0xba   : > { %p6417_p13 = pneg %p6416_p1 }
  0xbb   : > { %s5680_s26 = scalar_lea.hbm %s6415_s11, %s4360_s22  ;;  %p5233_p4 = por %p5232_p11, %p5231_p7 }
  0xbc   : > { %p5226_p3 = pnand %p5224_p2, %p6417_p13 }
  0xbe   : > { %p5227_p6 = pneg %p5226_p3 }
  0xc0   : > { %p5234_p9 = pnand %p5233_p4, %p5227_p6 }
  0xc2   : > { %5237 = shalt.err (!%p5234_p9)
}
  0xc3   : > { %4722 = dma.hbm_to_vmem [thread:$0]  (!%p6416_p1), %s6365_s15, 1024, %s513_s12, [#allocation7], %s5349_s18, %s5349_s18, %s5350_s7  }
  0xc4   : > { %s5238_s19 = scalar_lea.hbm %s5680_s26, 4096  ;;  %s5243_s23 = scalar_lea.hbm %s6415_s11, 8192 }
  0xc5   : > { %p5239_p8 = scmp.ne.s32.totalorder %s5680_s26, %s5238_s19  ;;  %p5244_p2 = scmp.lt.s32.totalorder %s5680_s26, %s6415_s11 }
  0xc6   : > { %p5245_p13 = scmp.lt.s32.totalorder %s5243_s23, %s5238_s19 }
  0xc7   : > { %p5241_p10 = pnand %p5239_p8, %p5554_p5 }
  0xc8   : > { %p5246_p3 = por %p5245_p13, %p5244_p2 }
  0xc9   : > { %p5242_p12 = pneg %p5241_p10 }
  0xcb   : > { %p5247_p6 = pnand %p5246_p3, %p5242_p12 }
  0xcd   : > { %5250 = shalt.err (!%p5247_p6)
}
  0xce   : > { %s5251_s5 = scalar_lea.vmem %s652_s21, 4096  ;;  %s5357_s16 = smov [#allocation12]  }
  0xcf   : > { %p5252_p1 = scmp.ne.s32.totalorder %s652_s21, %s5251_s5  ;;  %s5256_s12 = sshll.u32 %s5357_s16, 4  ;;  %s5257_s12 = int_to_ptr.vmem [resolvable:$false] %s5256_s12 }
  0xd0   : > { %s5258_s13 = scalar_lea.vmem %s5257_s12, 8192  ;;  %p5259_p4 = scmp.lt.s32.totalorder %s652_s21, %s5257_s12 }
  0xd1   : > { %p5254_p7 = pnand %p5252_p1, %p5554_p5  ;;  %p5260_p9 = scmp.lt.s32.totalorder %s5258_s13, %s5251_s5 }
  0xd3   : > { %p5255_p11 = pneg %p5254_p7  ;;  %p5261_p8 = por %p5260_p9, %p5259_p4 }
  0xd5   : > { %p5262_p10 = pnand %p5261_p8, %p5255_p11 }
  0xd7   : > { %5265 = shalt.err (!%p5262_p10)
}
  0xd8   : > { %4738 = dma.hbm_to_vmem [thread:$0]  (!%p5522_p0), %s5680_s26, 4096, %s652_s21, %s5548_s6, %s5349_s18, %s5349_s18, %s5350_s7  }
  0xd9   : > { %p6418_p5 = scmp.ne.s32.totalorder %s6401_s20, 0 }
  0xda   : > { %p6419_p12 = scmp.eq.s32.totalorder (!%p6418_p5), %s5474_s28, 0 }
  0xdb   : > { %669 = sbr.rel (%p6418_p5) target bundleno = 3233 (0xca1), region = 88 }
  0xe0   : > { %5307 = dma.done.wait (%p6419_p12), [#allocation4], 512   ;;  %p6420_p2 = pmov %p6419_p12 }
  0xe2   : > { %5309 = vsyncadd (%p6420_p2), [#allocation4], 4294966784  ;;  %p6421_p13 = pmov %p6420_p2 }
  0xe3   : > { %p6422_p3 = pmov %p6420_p2 }
  0xe4   : > { %5311 = dma.done.wait (%p6421_p13), [#allocation7], 256  }
  0xe5   : > { %5313 = vsyncadd (%p6422_p3), [#allocation7], 4294967040  ;;  %s679_s30 = sand.u32 1, %s5474_s28   ;;  %s5727_s6 = sand.u32 1, %s5332_s25  }
  0xe6   : > { %s4686_s20 = smul.u32 192, %s5727_s6  ;;  %s680_s17 = scalar_lea.sflag [#allocation4], %s679_s30 }
  0xe7   : > { %p6423_p0 = scmp.ne.s32.totalorder %s6400_s1, 0 }
  0xe8   : > { %s5730_s18 = scalar_lea.vmem [#allocation8], %s4686_s20 }
  0xe9   : > { %5315 = dma.done.wait (%p6423_p0), %s680_s17, 12304  }
  0xea   : > { %5317 = vsyncadd (%p6423_p0), %s680_s17, 4294954992  ;;  %s4187_s7 = sshll.u32 %s5727_s6, 6  ;;  %s4188_s14 = sshll.u32 %s5727_s6, 8 }
  0xeb   : > { %s5738_s26 = scalar_lea.vmem [#allocation9], %s4187_s7  ;;  %s5741_s21 = scalar_lea.vmem [#allocation11], %s4188_s14 }
  0xec   : > { %s5743_s10 = scalar_lea.vmem [#allocation12], %s4188_s14  ;;  %p6424_p6 = pmov %p6420_p2 }
  0xed   : > { %p6425_p1 = pmov %p6420_p2 }
  0xee   : > { %5319 = dma.done.wait (%p6424_p6), [#allocation7], 1024  }
  0xef   : > { %5321 = vsyncadd (%p6425_p1), [#allocation7], 4294966272  ;;  %p806_p7 = scmp.lt.s32.totalorder %s5474_s28, 1  ;;  %s6426_s23 = sld [smem:[#allocation25_spill]] }
  0xf0   : > { %s6427_s16 = sld [smem:[#allocation28_spill]]  ;;  %p6431_p11 = scmp.ne.s32.totalorder %s5474_s28, 0 }
  0xf1   : > { %s5751_s1 = scalar_select %p806_p7, %s5474_s28, 1 }
  0xf2   : > { %s6428_s20 = sld [smem:[#allocation29_spill]] }
  0xf3   : > { %s4191_s7 = sshll.u32 %s5751_s1, 2  ;;  %s6429_s0 = sld [smem:[#allocation34_spill]] }
  0xf4   : > { %s6430_s19 = sld [smem:[#allocation32_spill]] }
  0xf5   : > { %s811_s4 = scalar_lea.vmem %s6426_s23, %s5751_s1 }
  0xf6   : > { %s814_s12 = scalar_lea.vmem %s6427_s16, %s5751_s1  ;;  %829 = sbr.rel (%p6431_p11) target bundleno = 254 (0xfe), region = 124 }
  0xf8   : > { %s817_s17 = scalar_lea.vmem %s6428_s20, %s5751_s1 }
  0xf9   : > { %s824_s29 = scalar_lea.vmem %s6429_s0, %s5751_s1 }
  0xfa   : > { %s5777_s11 = scalar_lea.vmem %s6430_s19, %s4191_s7 }
  0xfb   : > { %v830_v0 = vld [vmem:[#allocation3] sm:$0xff]  ;;  %v831_v1 = vld [vmem:[#allocation3 + $0x8] sm:$0xff]  ;;  %v832_v2 = vld [vmem:[#allocation3 + $0x10] sm:$0xff] }
  0xfc   : > { %834 = vst [vmem:[#allocation2 + $0x10] sm:$0xff] %v830_v0  ;;  %835 = vst [vmem:[#allocation2] sm:$0xff] %v831_v1  ;;  %v833_v3 = vld [vmem:[#allocation3 + $0x18] sm:$0xff] }
  0xfd   : > { %836 = vst [vmem:[#allocation2 + $0x18] sm:$0xff] %v832_v2  ;;  %837 = vst [vmem:[#allocation2 + $0x8] sm:$0xff] %v833_v3 }
  0xfe PF: > { %v4828_v8 = vld [vmem:[%s5730_s18 + $0xac] ss:$12 sps:$4 sm:$0xff]   ;;  %v4830_v9 = vld [vmem:[%s5730_s18 + $0xa8] ss:$12 sps:$4 sm:$0xff]   ;;  %v4833_v27 = vld [vmem:[%s5730_s18 + $0xb0] ss:$12 sps:$4 sm:$0xff]  }
  0xff   : > { %1071 = vmatprep.subr.bf16.mxu0 %v4828_v8  ;;  %v4831_v26 = vld [vmem:[%s5730_s18 + $0x94] ss:$12 sps:$4 sm:$0xff]   ;;  %v4834_v28 = vld [vmem:[%s5730_s18 + $0x90] ss:$12 sps:$4 sm:$0xff]   ;;  %4512 = vmatprep.subr.bf16.mxu1 %v4833_v27  ;;  %v4837_v30 = vld [vmem:[%s5730_s18 + $0x98] ss:$12 sps:$4 sm:$0xff]  }
 0x100   : > { %1072 = vmatpush1.bf16.msra.mxu0 %v4830_v9  ;;  %4513 = vmatpush3.bf16.msra.mxu1 %v4833_v27  ;;  %v4835_v29 = vld [vmem:[%s5730_s18 + $0x7c] ss:$12 sps:$4 sm:$0xff]   ;;  %v4838_v31 = vld [vmem:[%s5730_s18 + $0x78] ss:$12 sps:$4 sm:$0xff]   ;;  %v4841_v33 = vld [vmem:[%s5730_s18 + $0x80] ss:$12 sps:$4 sm:$0xff]  }
 0x101   : > { %1073 = vmatprep.subr.bf16.mxu0 %v4831_v26  ;;  %4514 = vmatprep.subr.bf16.mxu1 %v4837_v30  ;;  %v4839_v32 = vld [vmem:[%s5730_s18 + $0x64] ss:$12 sps:$4 sm:$0xff]   ;;  %v4842_v34 = vld [vmem:[%s5730_s18 + $0x60] ss:$12 sps:$4 sm:$0xff]   ;;  %v4845_v36 = vld [vmem:[%s5730_s18 + $0x68] ss:$12 sps:$4 sm:$0xff]  }
 0x102   : > { %v4843_v35 = vld [vmem:[%s5730_s18 + $0x4c] ss:$12 sps:$4 sm:$0xff]   ;;  %v4846_v37 = vld [vmem:[%s5730_s18 + $0x48] ss:$12 sps:$4 sm:$0xff]   ;;  %v4849_v39 = vld [vmem:[%s5730_s18 + $0x50] ss:$12 sps:$4 sm:$0xff]  }
 0x103   : > { %v838_v4 = vld [vmem:[#allocation2 + $0x10] sm:$0xff]  ;;  %v839_v6 = vld [vmem:[#allocation2] sm:$0xff]  ;;  %v4851_v41 = vld [vmem:[%s5730_s18 + $0x1c] ss:$12 sps:$4 sm:$0xff]   ;;  %v5358_v43 = vmov 0   ;;  %vm1173_vm0 = vcmask 261120  }
 0x104   : > { %v840_v5 = vld [vmem:[#allocation2 + $0x18] sm:$0xff]  ;;  %844 = vadd.xlane.f32.xlu0 %v838_v4  ;;  %v841_v7 = vld [vmem:[#allocation2 + $0x8] sm:$0xff]  ;;  %1074 = vmatpush1.bf16.msra.mxu0 %v4834_v28  ;;  %v4847_v38 = vld [vmem:[%s5730_s18 + $0x34] ss:$12 sps:$4 sm:$0xff]   ;;  %s5359_s23 = smov 96   ;;  %s5361_s3 = smov 32  }
 0x105   : > { %848 = vadd.xlane.f32.xlu1 %v840_v5  ;;  %1075 = vmatprep.subr.bf16.mxu0 %v4835_v29  ;;  %v4850_v40 = vld [vmem:[%s5730_s18 + $0x30] ss:$12 sps:$4 sm:$0xff]   ;;  %v4853_v42 = vld [vmem:[%s5730_s18 + $0x38] ss:$12 sps:$4 sm:$0xff]   ;;  %v4857_v46 = vld [vmem:[%s5730_s18 + $0x20] ss:$12 sps:$4 sm:$0xff]  }
 0x106   : > { %4515 = vmatpush3.bf16.msra.mxu1 %v4837_v30  ;;  %1103 = vmatprep.mubr.bf16.mxu0 %v5358_v43  ;;  %v4854_v44 = vld [vmem:[%s5730_s18 + $0x18] ss:$12 sps:$4 sm:$0xff]   ;;  %v4858_v47 = vld [vmem:[%s5730_s18] ss:$12 sps:$4 sm:$0xff]   ;;  %v4859_v48 = vld [vmem:[%s5730_s18 + $0x8] ss:$12 sps:$4 sm:$0xff]  }
 0x107   : > { %4516 = vmatprep.subr.bf16.mxu1 %v4841_v33  ;;  %v4855_v45 = vld [vmem:[%s5730_s18 + $0x4] ss:$12 sps:$4 sm:$0xff]   ;;  %s6432_s18 = scalar_lea.vmem %s6352_s2, %s5751_s1  ;;  %vm1912_vm1 = vcmask 130048   ;;  %vm2829_vm2 = vcmask 523264   ;;  %vm2834_vm3 = vcmask 785408   ;;  %s6436_s30 = scalar_lea.vmem [#allocation10], %s5727_s6 }
 0x108   : > { %846 = vadd.xlane.f32.xlu0 %v839_v6  ;;  %1076 = vmatpush1.bf16.msra.mxu0 %v4838_v31  ;;  %v4193_v63 = vld [vmem:[%s6432_s18] ss:$0 sm:$0xff]  ;;  %p4343_p4 = scmp.ne.s32.totalorder %s5474_s28, 1 }
 0x109   : > { %850 = vadd.xlane.f32.xlu1 %v841_v7  ;;  %1077 = vmatprep.subr.bf16.mxu0 %v4839_v32  ;;  %s6438_s20 = sld [smem:[#allocation35_spill]] (!%p4343_p4) }
 0x10a   : > { %4517 = vmatpush3.bf16.msra.mxu1 %v4841_v33  ;;  %s6439_s14 = sld [smem:[#allocation36_spill]] (!%p4343_p4) }
 0x10b   : > { %4518 = vmatprep.subr.bf16.mxu1 %v4845_v36  ;;  %s6440_s8 = sld [smem:[#allocation37_spill]] (!%p4343_p4) }
 0x10c   : > { %1078 = vmatpush1.bf16.msra.mxu0 %v4842_v34 }
 0x10d   : > { %1079 = vmatprep.subr.bf16.mxu0 %v4843_v35 }
 0x10e   : > { %4519 = vmatpush3.bf16.msra.mxu1 %v4845_v36 }
 0x10f   : > { %4520 = vmatprep.subr.bf16.mxu1 %v4849_v39 }
 0x110   : > { %1080 = vmatpush1.bf16.msra.mxu0 %v4846_v37 }
 0x111   : > { %1081 = vmatprep.subr.bf16.mxu0 %v4847_v38 }
 0x112   : > { %4521 = vmatpush3.bf16.msra.mxu1 %v4849_v39 }
 0x113   : > { %4522 = vmatprep.subr.bf16.mxu1 %v4853_v42 }
 0x114   : > { %1082 = vmatpush1.bf16.msra.mxu0 %v4850_v40 }
 0x115   : > { %1083 = vmatprep.subr.bf16.mxu0 %v4851_v41 }
 0x116   : > { %4523 = vmatpush3.bf16.msra.mxu1 %v4853_v42 }
 0x117   : > { %4524 = vmatprep.subr.bf16.mxu1 %v4857_v46 }
 0x118   : > { %1084 = vmatpush1.bf16.msra.mxu0 %v4854_v44 }
 0x119   : > { %1085 = vmatprep.subr.bf16.mxu0 %v4855_v45 }
 0x11a   : > { %4525 = vmatpush3.bf16.msra.mxu1 %v4857_v46 }
 0x11b   : > { %4526 = vmatprep.subr.bf16.mxu1 %v4859_v48 }
 0x11c   : > { %1086 = vmatpush1.bf16.msra.mxu0 %v4858_v47 }
 0x11e   : > { %4527 = vmatpush3.bf16.msra.mxu1 %v4859_v48 }
 0x18d   : > { %v845_v10 = vpop.xlane.xlu0 %844 }
 0x18e   : > { %v849_v11 = vpop.xlane.xlu1 %848  ;;  %v853_v12 = vmul.f32 0.0078125, %v845_v10 }
 0x18f   : > { %v855_v13 = vmul.f32 0.0078125, %v849_v11 }
 0x190   : > { %v5783_v14 = vsub.f32 %v838_v4, %v853_v12  ;;  %v4194_v4 = vld [vmem:[%s811_s4] ss:$0 sm:$0xff]  ;;  %s5360_s4 = smov 64  }
 0x191   : > { %v5785_v15 = vsub.f32 %v840_v5, %v855_v13  ;;  %v847_v16 = vpop.xlane.xlu0 %846 }
 0x192   : > { %v851_v17 = vpop.xlane.xlu1 %850  ;;  %v854_v18 = vmul.f32 0.0078125, %v847_v16  ;;  %v861_v19 = vmul.f32 %v5783_v14, %v5783_v14 }
 0x193   : > { %v856_v20 = vmul.f32 0.0078125, %v851_v17  ;;  %v863_v23 = vmul.f32 %v5785_v15, %v5785_v15 }
 0x194   : > { %v5789_v21 = vsub.f32 %v839_v6, %v854_v18  ;;  %865 = vadd.xlane.f32.xlu0 %v861_v19 }
 0x195   : > { %v5791_v22 = vsub.f32 %v841_v7, %v856_v20 }
 0x196   : > { %v862_v24 = vmul.f32 %v5789_v21, %v5789_v21 }
 0x197   : > { %v864_v25 = vmul.f32 %v5791_v22, %v5791_v22 }
 0x198   : > { %869 = vadd.xlane.f32.xlu0 %v863_v23  ;;  %867 = vadd.xlane.f32.xlu1 %v862_v24 }
 0x19c   : > { %871 = vadd.xlane.f32.xlu1 %v864_v25 }
 0x21d   : > { %v866_v49 = vpop.xlane.xlu0 %865 }
 0x21e   : > { %v873_v50 = vmul.f32 0.0078125, %v866_v49 }
 0x220   : > { %v877_v51 = vadd.f32 1e-05, %v873_v50 }
 0x221   : > { %v868_v52 = vpop.xlane.xlu1 %867  ;;  %v870_v53 = vpop.xlane.xlu0 %869 }
 0x222   : > { %4948 = vrsqrt.f32 %v877_v51  ;;  %v874_v54 = vmul.f32 0.0078125, %v868_v52  ;;  %v875_v55 = vmul.f32 0.0078125, %v870_v53 }
 0x224   : > { %v878_v56 = vadd.f32 1e-05, %v874_v54  ;;  %v879_v57 = vadd.f32 1e-05, %v875_v55 }
 0x225   : > { %v872_v58 = vpop.xlane.xlu1 %871 }
 0x226   : > { %4950 = vrsqrt.f32 %v878_v56  ;;  %v876_v59 = vmul.f32 0.0078125, %v872_v58  ;;  %v1895_v58 = vld [vmem:[#allocation6 + $0x8] sm:$0xff] }
 0x227   : > { %4952 = vrsqrt.f32 %v879_v57 }
 0x228   : > { %v880_v60 = vadd.f32 1e-05, %v876_v59 }
 0x22a   : > { %4954 = vrsqrt.f32 %v880_v60  ;;  %v1894_v60 = vld [vmem:[#allocation6] sm:$0xff] }
 0x22f   : > { %v4949_v61 = vpop.eup %4948 }
 0x230   : > { %v885_v62 = vmul.f32 %v4949_v61, %v5783_v14 }
 0x232   : > { %v895_v3 = vmul.f32 %v4193_v63, %v885_v62 }
 0x233   : > { %v4951_v0 = vpop.eup %4950 }
 0x234   : > { %v4953_v1 = vpop.eup %4952  ;;  %v886_v2 = vmul.f32 %v4951_v0, %v5789_v21  ;;  %v905_v8 = vadd.f32 %v4194_v4, %v895_v3 }
 0x235   : > { %v887_v5 = vmul.f32 %v4953_v1, %v5785_v15 }
 0x236   : > { %v896_v6 = vmul.f32 %v4193_v63, %v886_v2 }
 0x237   : > { %v4955_v7 = vpop.eup %4954  ;;  %v897_v11 = vmul.f32 %v4193_v63, %v887_v5 }
 0x238   : > { %v906_v9 = vadd.f32 %v4194_v4, %v896_v6  ;;  %v888_v10 = vmul.f32 %v4955_v7, %v5791_v22 }
 0x239   : > { %v907_v14 = vadd.f32 %v4194_v4, %v897_v11 }
 0x23a   : > { %v909_v12 = vpack.c.bf16 %v906_v9, %v905_v8  ;;  %v898_v13 = vmul.f32 %v4193_v63, %v888_v10 }
 0x23c   : > { %1104 = vmatmul.mubr.bf16.vlgmr.msra.gmra.mxu0 %v909_v12  ;;  %4528 = vmatprep.mubr.bf16.mxu1 %v909_v12  ;;  %v908_v16 = vadd.f32 %v4194_v4, %v898_v13 }
 0x23d   : > { %1113 = vmatprep.mubr.bf16.mxu0 %v5358_v43 }
 0x23e   : > { %v910_v17 = vpack.c.bf16 %v908_v16, %v907_v14 }
 0x240   : > { %4529 = vmatmul.mubr.bf16.vlgmr.msra.gmra.mxu1 %v910_v17 }
 0x244   : > { %1114 = vmatmul.mubr.bf16.gmra.mxu0 %v910_v17 }
 0x2fc   : > { %v1105_v15 = vpop.f32.mrf.mxu0 }
 0x2fd   : > { %1348 = vrot.lane.b32.xlu1 %v1105_v15, %s5359_s23  ;;  %4536 = vmatprep.mubr.msk.f32.mxu1 %vm1173_vm0, %v1105_v15 }
 0x2fe   : > { %v1107_v18 = vpop.f32.mrf.mxu0 }
 0x2ff   : > { %1534 = vrot.lane.b32.xlu0 %v1107_v18, %s5360_s4 }
 0x300   : > { %v1109_v19 = vpop.f32.mrf.mxu0  ;;  %v5866_v25 = vpop.f32.mrf.mxu1 }
 0x301   : > { %1352 = vrot.lane.b32.xlu1 %v1107_v18, %s5359_s23 }
 0x302   : > { %v1111_v20 = vpop.f32.mrf.mxu0  ;;  %v5870_v26 = vpop.f32.mrf.mxu1 }
 0x303   : > { %1350 = vrot.lane.b32.xlu0 %v1109_v19, %s5359_s23  ;;  %4532 = vmatprep.subr.msk.mxu1 %vm1173_vm0, %v1111_v20 }
 0x304   : > { %v1115_v21 = vpop.f32.mrf.mxu0  ;;  %4533 = vmatpush3.xpose.msk.msra.mxu1 %vm1173_vm0, %v1111_v20  ;;  %v5874_v27 = vpop.f32.mrf.mxu1 }
 0x305   : > { %1536 = vrot.lane.b32.xlu1 %v1111_v20, %s5360_s4  ;;  %4534 = vmatprep.subr.msk.mxu1 %vm1173_vm0, %v1107_v18 }
 0x306   : > { %v1117_v22 = vpop.f32.mrf.mxu0  ;;  %v5878_v28 = vpop.f32.mrf.mxu1 }
 0x307   : > { %1354 = vrot.lane.b32.xlu0 %v1111_v20, %s5359_s23 }
 0x308   : > { %v1119_v23 = vpop.f32.mrf.mxu0  ;;  %4535 = vmatpush3.xpose.msk.msra.mxu1 %vm1173_vm0, %v1107_v18 }
 0x309   : > { %1443 = vrot.lane.b32.xlu1 %v1117_v22, %s5359_s23 }
 0x30a   : > { %v1121_v24 = vpop.f32.mrf.mxu0 }
 0x30b   : > { %1530 = vrot.lane.b32.xlu0 %v1105_v15, %s5360_s4  ;;  %4537 = vmatmul.mubr.msk.f32.vlgmr.msra.gmra.mxu1 %vm1173_vm0, %v1109_v19 }
 0x30c   : > { %4539 = vmatprep.subr.msk.mxu1 %vm1173_vm0, %v1121_v24  ;;  %4543 = vmatprep.mubr.msk.f32.mxu1 %vm1173_vm0, %v1115_v21 }
 0x30d   : > { %4540 = vmatpush3.xpose.msk.msra.mxu1 %vm1173_vm0, %v1121_v24  ;;  %1625 = vrot.lane.b32.xlu1 %v1117_v22, %s5360_s4 }
 0x30e   : > { %4541 = vmatprep.subr.msk.mxu1 %vm1173_vm0, %v1117_v22 }
 0x30f   : > { %1439 = vrot.lane.b32.xlu0 %v1115_v21, %s5359_s23 }
 0x311   : > { %4542 = vmatpush3.xpose.msk.msra.mxu1 %vm1173_vm0, %v1117_v22  ;;  %1445 = vrot.lane.b32.xlu1 %v1121_v24, %s5359_s23 }
 0x313   : > { %1441 = vrot.lane.b32.xlu0 %v1119_v23, %s5359_s23 }
 0x314   : > { %4544 = vmatmul.mubr.msk.f32.vlgmr.msra.gmra.mxu1 %vm1173_vm0, %v1119_v23 }
 0x315   : > { %1718 = vrot.lane.b32.xlu1 %v1111_v20, %s5361_s3 }
 0x317   : > { %1532 = vrot.lane.b32.xlu0 %v1109_v19, %s5360_s4 }
 0x319   : > { %1621 = vrot.lane.b32.xlu1 %v1115_v21, %s5360_s4 }
 0x31b   : > { %1716 = vrot.lane.b32.xlu0 %v1107_v18, %s5361_s3 }
 0x31d   : > { %1627 = vrot.lane.b32.xlu1 %v1121_v24, %s5360_s4 }
 0x31f   : > { %1809 = vrot.lane.b32.xlu0 %v1121_v24, %s5361_s3 }
 0x321   : > { %1623 = vrot.lane.b32.xlu1 %v1119_v23, %s5360_s4 }
 0x323   : > { %1712 = vrot.lane.b32.xlu0 %v1105_v15, %s5361_s3 }
 0x325   : > { %1807 = vrot.lane.b32.xlu1 %v1117_v22, %s5361_s3 }
 0x327   : > { %1803 = vrot.lane.b32.xlu0 %v1115_v21, %s5361_s3 }
 0x329   : > { %1714 = vrot.lane.b32.xlu1 %v1109_v19, %s5361_s3 }
 0x32b   : > { %2255 = vrot.lane.b32.xlu0 %v5878_v28, %s5359_s23 }
 0x32d   : > { %1805 = vrot.lane.b32.xlu1 %v1119_v23, %s5361_s3 }
 0x32f   : > { %2431 = vrot.lane.b32.xlu0 %v5878_v28, %s5360_s4 }
 0x331   : > { %2344 = vrot.lane.b32.xlu1 %v5874_v27, %s5359_s23 }
 0x335   : > { %2253 = vrot.lane.b32.xlu1 %v5870_v26, %s5359_s23 }
 0x339   : > { %2342 = vrot.lane.b32.xlu1 %v5866_v25, %s5359_s23 }
 0x33d   : > { %2518 = vrot.lane.b32.xlu1 %v5874_v27, %s5360_s4 }
 0x36f   : > { %v1349_v29 = vpop.permute.xlu1 %1348 }
 0x370   : > { %4550 = vmatprep.mubr.msk.f32.mxu1 %vm1173_vm0, %v1349_v29 }
 0x371   : > { %v1535_v30 = vpop.permute.xlu0 %1534 }
 0x373   : > { %v1353_v31 = vpop.permute.xlu1 %1352 }
 0x375   : > { %v1351_v32 = vpop.permute.xlu0 %1350 }
 0x377   : > { %v1537_v33 = vpop.permute.xlu1 %1536 }
 0x379   : > { %v1355_v34 = vpop.permute.xlu0 %1354 }
 0x37a   : > { %4546 = vmatprep.subr.msk.mxu1 %vm1173_vm0, %v1355_v34 }
 0x37b   : > { %v1444_v35 = vpop.permute.xlu1 %1443  ;;  %4547 = vmatpush3.xpose.msk.msra.mxu1 %vm1173_vm0, %v1355_v34 }
 0x37c   : > { %4548 = vmatprep.subr.msk.mxu1 %vm1173_vm0, %v1353_v31 }
 0x37d   : > { %v1531_v36 = vpop.permute.xlu0 %1530 }
 0x37f   : > { %v1626_v37 = vpop.permute.xlu1 %1625  ;;  %4549 = vmatpush3.xpose.msk.msra.mxu1 %vm1173_vm0, %v1353_v31 }
 0x381   : > { %v1440_v38 = vpop.permute.xlu0 %1439 }
 0x382   : > { %4551 = vmatmul.mubr.msk.f32.vlgmr.msra.gmra.mxu1 %vm1173_vm0, %v1351_v32 }
 0x383   : > { %v1446_v39 = vpop.permute.xlu1 %1445  ;;  %4557 = vmatprep.mubr.msk.f32.mxu1 %vm1173_vm0, %v1440_v38 }
 0x384   : > { %4553 = vmatprep.subr.msk.mxu1 %vm1173_vm0, %v1446_v39 }
 0x385   : > { %4554 = vmatpush3.xpose.msk.msra.mxu1 %vm1173_vm0, %v1446_v39  ;;  %v1442_v40 = vpop.permute.xlu0 %1441 }
 0x386   : > { %4555 = vmatprep.subr.msk.mxu1 %vm1173_vm0, %v1444_v35 }
 0x387   : > { %v1719_v41 = vpop.permute.xlu1 %1718 }
 0x389   : > { %4556 = vmatpush3.xpose.msk.msra.mxu1 %vm1173_vm0, %v1444_v35  ;;  %v1533_v42 = vpop.permute.xlu0 %1532 }
 0x38a   : > { %4560 = vmatprep.subr.msk.mxu1 %vm1173_vm0, %v1537_v33 }
 0x38b   : > { %v1622_v44 = vpop.permute.xlu1 %1621 }
 0x38c   : > { %4558 = vmatmul.mubr.msk.f32.vlgmr.msra.gmra.mxu1 %vm1173_vm0, %v1442_v40  ;;  %4571 = vmatprep.mubr.msk.f32.mxu0 %vm1173_vm0, %v1622_v44 }
 0x38d   : > { %4561 = vmatpush3.xpose.msk.msra.mxu1 %vm1173_vm0, %v1537_v33  ;;  %4564 = vmatprep.mubr.msk.f32.mxu1 %vm1173_vm0, %v1531_v36  ;;  %v1717_v45 = vpop.permute.xlu0 %1716 }
 0x38e   : > { %4562 = vmatprep.subr.msk.mxu1 %vm1173_vm0, %v1535_v30 }
 0x38f   : > { %v1628_v46 = vpop.permute.xlu1 %1627 }
 0x390   : > { %4567 = vmatprep.subr.msk.mxu0 %vm1173_vm0, %v1628_v46 }
 0x391   : > { %4563 = vmatpush3.xpose.msk.msra.mxu1 %vm1173_vm0, %v1535_v30  ;;  %4568 = vmatpush3.xpose.msk.msra.mxu0 %vm1173_vm0, %v1628_v46  ;;  %v1810_v47 = vpop.permute.xlu0 %1809 }
 0x392   : > { %4569 = vmatprep.subr.msk.mxu0 %vm1173_vm0, %v1626_v37  ;;  %4574 = vmatprep.subr.msk.mxu1 %vm1173_vm0, %v1719_v41 }
 0x393   : > { %v1624_v48 = vpop.permute.xlu1 %1623 }
 0x394   : > { %4565 = vmatmul.mubr.msk.f32.vlgmr.msra.gmra.mxu1 %vm1173_vm0, %v1533_v42 }
 0x395   : > { %4570 = vmatpush3.xpose.msk.msra.mxu0 %vm1173_vm0, %v1626_v37  ;;  %4575 = vmatpush3.xpose.msk.msra.mxu1 %vm1173_vm0, %v1719_v41  ;;  %v1713_v49 = vpop.permute.xlu0 %1712 }
 0x396   : > { %4576 = vmatprep.subr.msk.mxu1 %vm1173_vm0, %v1717_v45  ;;  %4578 = vmatprep.mubr.msk.f32.mxu1 %vm1173_vm0, %v1713_v49 }
 0x397   : > { %4581 = vmatprep.subr.msk.mxu0 %vm1173_vm0, %v1810_v47  ;;  %v1808_v50 = vpop.permute.xlu1 %1807 }
 0x398   : > { %4572 = vmatmul.mubr.msk.f32.vlgmr.msra.gmra.mxu0 %vm1173_vm0, %v1624_v48 }
 0x399   : > { %4577 = vmatpush3.xpose.msk.msra.mxu1 %vm1173_vm0, %v1717_v45  ;;  %4582 = vmatpush3.xpose.msk.msra.mxu0 %vm1173_vm0, %v1810_v47  ;;  %v1804_v51 = vpop.permute.xlu0 %1803 }
 0x39a   : > { %4583 = vmatprep.subr.msk.mxu0 %vm1173_vm0, %v1808_v50  ;;  %4585 = vmatprep.mubr.msk.f32.mxu0 %vm1173_vm0, %v1804_v51 }
 0x39b   : > { %4588 = vmatprep.subr.mxu1 %v5878_v28  ;;  %v1715_v52 = vpop.permute.xlu1 %1714 }
 0x39c   : > { %4579 = vmatmul.mubr.msk.f32.vlgmr.msra.gmra.mxu1 %vm1173_vm0, %v1715_v52 }
 0x39d   : > { %4584 = vmatpush3.xpose.msk.msra.mxu0 %vm1173_vm0, %v1808_v50  ;;  %4589 = vmatpush3.msra.mxu1 %v5878_v28  ;;  %v2256_v53 = vpop.permute.xlu0 %2255 }
 0x39e   : > { %4590 = vmatprep.subr.mxu1 %v5870_v26  ;;  %4602 = vmatprep.subr.mxu0 %v2256_v53 }
 0x39f   : > { %v1806_v54 = vpop.permute.xlu1 %1805  ;;  %4591 = vmatpush3.msra.mxu1 %v5870_v26 }
 0x3a0   : > { %4586 = vmatmul.mubr.msk.f32.vlgmr.msra.gmra.mxu0 %vm1173_vm0, %v1806_v54  ;;  %4595 = vmatprep.subr.mxu1 %v5874_v27 }
 0x3a1   : > { %4603 = vmatpush3.msra.mxu0 %v2256_v53  ;;  %v5936_v57 = vpop.permute.xlu0 %2431 }
 0x3a3   : > { %v5934_v55 = vpop.permute.xlu1 %2344 }
 0x3a7   : > { %v2254_v56 = vpop.permute.xlu1 %2253 }
 0x3a8   : > { %4604 = vmatprep.subr.mxu0 %v2254_v56 }
 0x3a9   : > { %4605 = vmatpush3.msra.mxu0 %v2254_v56 }
 0x3aa   : > { %4616 = vmatprep.subr.mxu0 %v5936_v57 }
 0x3ab   : > { %v6005_v49 = vpop.permute.xlu1 %2342 }
 0x3af   : > { %v6011_v50 = vpop.permute.xlu1 %2518 }
 0x3cb   : > { %v4538_v59 = vpop.f32.mrf.mxu1 }
 0x3cc   : > { %v5939_v61 = vadd.f32 %v4538_v59, %v1895_v58 }
 0x3cd   : > { %v1252_v62 = vpop.f32.mrf.mxu1 }
 0x3ce   : > { %v5941_v63 = vadd.f32 %v1894_v60, %v1252_v62  ;;  %v1916_v0 = vsel %vm1912_vm1, %v5939_v61, -inf }
 0x3cf   : > { %1917 = vmax.xlane.f32.xlu1 %v1916_v0 }
 0x3d0   : > { %v1913_v1 = vsel %vm1912_vm1, %v5941_v63, -inf }
 0x3d1   : > { %1914 = vmax.xlane.f32.xlu0 %v1913_v1 }
 0x3d4   : > { %v4545_v2 = vpop.f32.mrf.mxu1 }
 0x3d5   : > { %v5947_v3 = vadd.f32 %v4545_v2, %v1895_v58 }
 0x3d6   : > { %v1339_v4 = vpop.f32.mrf.mxu1 }
 0x3d7   : > { %v5949_v5 = vadd.f32 %v1894_v60, %v1339_v4  ;;  %v1922_v6 = vsel %vm1912_vm1, %v5947_v3, -inf }
 0x3d8   : > { %1923 = vmax.xlane.f32.xlu0 %v1922_v6 }
 0x3d9   : > { %v1919_v7 = vsel %vm1912_vm1, %v5949_v5, -inf }
 0x3dc   : > { %1920 = vmax.xlane.f32.xlu0 %v1919_v7 }
 0x442   : > { %v4552_v8 = vpop.f32.mrf.mxu1 }
 0x443   : > { %v5955_v9 = vadd.f32 %v4552_v8, %v1895_v58 }
 0x444   : > { %v1430_v10 = vpop.f32.mrf.mxu1 }
 0x445   : > { %v5957_v11 = vadd.f32 %v1894_v60, %v1430_v10  ;;  %v1928_v12 = vsel %vm1912_vm1, %v5955_v9, -inf }
 0x446   : > { %1929 = vmax.xlane.f32.xlu1 %v1928_v12 }
 0x447   : > { %v1925_v13 = vsel %vm1912_vm1, %v5957_v11, -inf }
 0x448   : > { %1926 = vmax.xlane.f32.xlu0 %v1925_v13 }
 0x44c   : > { %v4559_v14 = vpop.f32.mrf.mxu1 }
 0x44d   : > { %v5963_v16 = vadd.f32 %v4559_v14, %v1895_v58 }
 0x44e   : > { %v1521_v17 = vpop.f32.mrf.mxu1 }
 0x44f   : > { %v5965_v15 = vadd.f32 %v1894_v60, %v1521_v17  ;;  %v1934_v18 = vsel %vm1912_vm1, %v5963_v16, -inf }
 0x450   : > { %1935 = vmax.xlane.f32.xlu1 %v1934_v18 }
 0x451   : > { %v1931_v19 = vsel %vm1912_vm1, %v5965_v15, -inf }
 0x452   : > { %1932 = vmax.xlane.f32.xlu0 %v1931_v19 }
 0x454   : > { %v4566_v20 = vpop.f32.mrf.mxu1 }
 0x455   : > { %v5973_v29 = vadd.f32 %v4566_v20, %v1895_v58 }
 0x456   : > { %v1612_v23 = vpop.f32.mrf.mxu1 }
 0x457   : > { %v5979_v32 = vadd.f32 %v1894_v60, %v1612_v23  ;;  %v1940_v35 = vsel %vm1912_vm1, %v5973_v29, -inf }
 0x458   : > { %v4573_v21 = vpop.f32.mrf.mxu0  ;;  %v1918_v52 = vpop.xlane.xlu1 %1917 }
 0x459   : > { %v5971_v22 = vadd.f32 %v4573_v21, %v1895_v58  ;;  %v1937_v38 = vsel %vm1912_vm1, %v5979_v32, -inf  ;;  %v1962_v54 = vsub.f32 %v5939_v61, %v1918_v52 }
 0x45a   : > { %v1703_v24 = vpop.f32.mrf.mxu0  ;;  %v1915_v51 = vpop.xlane.xlu0 %1914 }
 0x45b   : > { %v5975_v30 = vadd.f32 %v1894_v60, %v1703_v24  ;;  %v1946_v31 = vsel %vm1912_vm1, %v5971_v22, -inf  ;;  %v1961_v56 = vsub.f32 %v5941_v63, %v1915_v51  ;;  %v1979_v59 = vmul.f32 1.442695, %v1962_v54 }
 0x45c   : > { %1947 = vmax.xlane.f32.xlu1 %v1946_v31  ;;  %v4580_v34 = vpop.f32.mrf.mxu1 }
 0x45d   : > { %v1943_v33 = vsel %vm1912_vm1, %v5975_v30, -inf  ;;  %v5989_v41 = vadd.f32 %v4580_v34, %v1895_v58  ;;  %v1977_v62 = vmul.f32 1.442695, %v1961_v56  ;;  %4956 = vpow2.f32 %v1979_v59 }
 0x45e   : > { %1944 = vmax.xlane.f32.xlu0 %v1943_v33  ;;  %v1794_v39 = vpop.f32.mrf.mxu1 }
 0x45f   : > { %v5995_v45 = vadd.f32 %v1894_v60, %v1794_v39  ;;  %v1952_v47 = vsel %vm1912_vm1, %v5989_v41, -inf  ;;  %4958 = vpow2.f32 %v1977_v62 }
 0x460   : > { %1941 = vmax.xlane.f32.xlu1 %v1940_v35  ;;  %v4587_v36 = vpop.f32.mrf.mxu0 }
 0x461   : > { %v5985_v37 = vadd.f32 %v4587_v36, %v1895_v58  ;;  %v1949_v48 = vsel %vm1912_vm1, %v5995_v45, -inf  ;;  %v1924_v53 = vpop.xlane.xlu0 %1923 }
 0x462   : > { %1938 = vmax.xlane.f32.xlu0 %v1937_v38  ;;  %v1885_v40 = vpop.f32.mrf.mxu0 }
 0x463   : > { %v5991_v42 = vadd.f32 %v1894_v60, %v1885_v40  ;;  %v1958_v44 = vsel %vm1912_vm1, %v5985_v37, -inf  ;;  %v1964_v60 = vsub.f32 %v5947_v3, %v1924_v53 }
 0x464   : > { %1959 = vmax.xlane.f32.xlu1 %v1958_v44 }
 0x465   : > { %v1955_v46 = vsel %vm1912_vm1, %v5991_v42, -inf  ;;  %v1921_v58 = vpop.xlane.xlu0 %1920  ;;  %v1983_v1 = vmul.f32 1.442695, %v1964_v60 }
 0x466   : > { %1956 = vmax.xlane.f32.xlu0 %v1955_v46  ;;  %v1963_v0 = vsub.f32 %v5949_v5, %v1921_v58 }
 0x467   : > { %4960 = vpow2.f32 %v1983_v1 }
 0x468   : > { %1953 = vmax.xlane.f32.xlu1 %v1952_v47  ;;  %v1981_v2 = vmul.f32 1.442695, %v1963_v0 }
 0x46a   : > { %1950 = vmax.xlane.f32.xlu0 %v1949_v48  ;;  %4962 = vpow2.f32 %v1981_v2 }
 0x479   : > { %2516 = vrot.lane.b32.xlu1 %v5866_v25, %s5360_s4 }
 0x47d   : > { %2692 = vrot.lane.b32.xlu1 %v5874_v27, %s5361_s3 }
 0x480   : > { %2429 = vrot.lane.b32.xlu0 %v5870_v26, %s5360_s4 }
 0x484   : > { %2605 = vrot.lane.b32.xlu0 %v5878_v28, %s5361_s3  ;;  %v6019_v28 = vpop.eup %4956 }
 0x485   : > { %v6021_v4 = vpop.eup %4958  ;;  %v2012_v61 = vsel %vm1912_vm1, %v6019_v28, 0.0 }
 0x486   : > { %v6025_v63 = vpop.eup %4960  ;;  %v2009_v3 = vsel %vm1912_vm1, %v6021_v4, 0.0 }
 0x487   : > { %v6029_v5 = vpop.eup %4962  ;;  %v2018_v6 = vsel %vm1912_vm1, %v6025_v63, 0.0 }
 0x488   : > { %v2015_v7 = vsel %vm1912_vm1, %v6029_v5, 0.0 }
 0x4a1   : > { %2013 = vadd.xlane.f32.xlu1 %v2012_v61 }
 0x4a3   : > { %2010 = vadd.xlane.f32.xlu0 %v2009_v3 }
 0x4a5   : > { %2019 = vadd.xlane.f32.xlu1 %v2018_v6 }
 0x4a7   : > { %2016 = vadd.xlane.f32.xlu0 %v2015_v7 }
 0x4cf   : > { %v1930_v8 = vpop.xlane.xlu1 %1929 }
 0x4d0   : > { %v1966_v10 = vsub.f32 %v5955_v9, %v1930_v8 }
 0x4d1   : > { %v1927_v12 = vpop.xlane.xlu0 %1926 }
 0x4d2   : > { %v1987_v13 = vmul.f32 1.442695, %v1966_v10  ;;  %v1965_v14 = vsub.f32 %v5957_v11, %v1927_v12 }
 0x4d4   : > { %4964 = vpow2.f32 %v1987_v13  ;;  %v1985_v17 = vmul.f32 1.442695, %v1965_v14 }
 0x4d6   : > { %4966 = vpow2.f32 %v1985_v17 }
 0x4d9   : > { %v1936_v18 = vpop.xlane.xlu1 %1935 }
 0x4da   : > { %v1968_v19 = vsub.f32 %v5963_v16, %v1936_v18 }
 0x4db   : > { %v1933_v20 = vpop.xlane.xlu0 %1932 }
 0x4dc   : > { %v1991_v21 = vmul.f32 1.442695, %v1968_v19  ;;  %v1967_v23 = vsub.f32 %v5965_v15, %v1933_v20 }
 0x4de   : > { %4968 = vpow2.f32 %v1991_v21  ;;  %v1989_v24 = vmul.f32 1.442695, %v1967_v23 }
 0x4e0   : > { %4970 = vpow2.f32 %v1989_v24 }
 0x4e1   : > { %v6039_v31 = vpop.eup %4964 }
 0x4e2   : > { %v2024_v9 = vsel %vm1912_vm1, %v6039_v31, 0.0 }
 0x4e3   : > { %v6043_v33 = vpop.eup %4966  ;;  %2025 = vadd.xlane.f32.xlu1 %v2024_v9 }
 0x4e4   : > { %v2021_v11 = vsel %vm1912_vm1, %v6043_v33, 0.0 }
 0x4e5   : > { %v1948_v34 = vpop.xlane.xlu1 %1947  ;;  %2022 = vadd.xlane.f32.xlu0 %v2021_v11 }
 0x4e6   : > { %v1972_v16 = vsub.f32 %v5971_v22, %v1948_v34 }
 0x4e7   : > { %v1945_v35 = vpop.xlane.xlu0 %1944 }
 0x4e8   : > { %v1999_v15 = vmul.f32 1.442695, %v1972_v16  ;;  %v1971_v36 = vsub.f32 %v5975_v30, %v1945_v35 }
 0x4e9   : > { %v1942_v38 = vpop.xlane.xlu1 %1941 }
 0x4ea   : > { %4972 = vpow2.f32 %v1999_v15  ;;  %v1997_v39 = vmul.f32 1.442695, %v1971_v36  ;;  %v1970_v40 = vsub.f32 %v5973_v29, %v1942_v38 }
 0x4eb   : > { %v6050_v44 = vpop.eup %4968  ;;  %v1939_v46 = vpop.xlane.xlu0 %1938 }
 0x4ec   : > { %4974 = vpow2.f32 %v1997_v39  ;;  %v1995_v47 = vmul.f32 1.442695, %v1970_v40  ;;  %v1969_v48 = vsub.f32 %v5979_v32, %v1939_v46  ;;  %v2030_v51 = vsel %vm1912_vm1, %v6050_v44, 0.0 }
 0x4ed   : > { %v6055_v22 = vpop.eup %4970  ;;  %v1960_v52 = vpop.xlane.xlu1 %1959  ;;  %2031 = vadd.xlane.f32.xlu1 %v2030_v51 }
 0x4ee   : > { %4976 = vpow2.f32 %v1995_v47  ;;  %v1993_v30 = vmul.f32 1.442695, %v1969_v48  ;;  %v1976_v53 = vsub.f32 %v5985_v37, %v1960_v52  ;;  %v2027_v29 = vsel %vm1912_vm1, %v6055_v22, 0.0 }
 0x4ef   : > { %2028 = vadd.xlane.f32.xlu0 %v2027_v29  ;;  %v1957_v54 = vpop.xlane.xlu0 %1956 }
 0x4f0   : > { %4978 = vpow2.f32 %v1993_v30  ;;  %v2007_v56 = vmul.f32 1.442695, %v1976_v53  ;;  %v1975_v32 = vsub.f32 %v5991_v42, %v1957_v54 }
 0x4f1   : > { %v1954_v58 = vpop.xlane.xlu1 %1953 }
 0x4f2   : > { %4980 = vpow2.f32 %v2007_v56  ;;  %v2005_v59 = vmul.f32 1.442695, %v1975_v32  ;;  %v1974_v60 = vsub.f32 %v5989_v41, %v1954_v58 }
 0x4f3   : > { %v1951_v62 = vpop.xlane.xlu0 %1950 }
 0x4f4   : > { %4982 = vpow2.f32 %v2005_v59  ;;  %v2003_v0 = vmul.f32 1.442695, %v1974_v60  ;;  %v1973_v1 = vsub.f32 %v5995_v45, %v1951_v62 }
 0x4f5   : > { %v6099_v20 = vpop.permute.xlu1 %2516 }
 0x4f6   : > { %4984 = vpow2.f32 %v2003_v0  ;;  %v2001_v37 = vmul.f32 1.442695, %v1973_v1 }
 0x4f7   : > { %v6063_v2 = vpop.eup %4972  ;;  %v2430_v21 = vpop.permute.xlu0 %2429 }
 0x4f8   : > { %4986 = vpow2.f32 %v2001_v37  ;;  %v2042_v61 = vsel %vm1912_vm1, %v6063_v2, 0.0 }
 0x4f9   : > { %v6067_v3 = vpop.eup %4974  ;;  %2043 = vadd.xlane.f32.xlu1 %v2042_v61  ;;  %v6101_v23 = vpop.permute.xlu1 %2692 }
 0x4fa   : > { %v2039_v42 = vsel %vm1912_vm1, %v6067_v3, 0.0 }
 0x4fb   : > { %v6071_v41 = vpop.eup %4976  ;;  %2040 = vadd.xlane.f32.xlu0 %v2039_v42  ;;  %v6103_v24 = vpop.permute.xlu0 %2605 }
 0x4fc   : > { %v2036_v45 = vsel %vm1912_vm1, %v6071_v41, 0.0 }
 0x4fd   : > { %v6075_v6 = vpop.eup %4978  ;;  %2037 = vadd.xlane.f32.xlu1 %v2036_v45 }
 0x4fe   : > { %v2033_v7 = vsel %vm1912_vm1, %v6075_v6, 0.0 }
 0x4ff   : > { %v6079_v8 = vpop.eup %4980  ;;  %2034 = vadd.xlane.f32.xlu0 %v2033_v7  ;;  %v4860_v7 = vld [vmem:[%s5738_s26 + $0x38] sm:$0xff]  }
 0x500   : > { %v2054_v10 = vsel %vm1912_vm1, %v6079_v8, 0.0 }
 0x501   : > { %v6083_v12 = vpop.eup %4982  ;;  %2055 = vadd.xlane.f32.xlu1 %v2054_v10 }
 0x502   : > { %v2051_v13 = vsel %vm1912_vm1, %v6083_v12, 0.0 }
 0x503   : > { %v6087_v14 = vpop.eup %4984  ;;  %2052 = vadd.xlane.f32.xlu0 %v2051_v13 }
 0x504   : > { %v2048_v17 = vsel %vm1912_vm1, %v6087_v14, 0.0 }
 0x505   : > { %v6091_v18 = vpop.eup %4986  ;;  %2049 = vadd.xlane.f32.xlu1 %v2048_v17 }
 0x506   : > { %v2045_v19 = vsel %vm1912_vm1, %v6091_v18, 0.0 }
 0x507   : > { %2046 = vadd.xlane.f32.xlu0 %v2045_v19 }
 0x516   : > { %2690 = vrot.lane.b32.xlu1 %v5866_v25, %s5361_s3 }
 0x51d   : > { %2603 = vrot.lane.b32.xlu0 %v5870_v26, %s5361_s3 }
 0x52a   : > { %v2014_v9 = vpop.xlane.xlu1 %2013 }
 0x52b   : > { %4988 = vrcp.f32 %v2014_v9 }
 0x52c   : > { %v2011_v11 = vpop.xlane.xlu0 %2010 }
 0x52d   : > { %4990 = vrcp.f32 %v2011_v11  ;;  %v4864_v11 = vld [vmem:[%s5738_s26 + $0x18] sm:$0xff]  }
 0x52e   : > { %v2020_v34 = vpop.xlane.xlu1 %2019 }
 0x52f   : > { %4992 = vrcp.f32 %v2020_v34  ;;  %v4865_v34 = vld [vmem:[%s5738_s26 + $0x10] sm:$0xff]  }
 0x530   : > { %v2017_v16 = vpop.xlane.xlu0 %2016 }
 0x531   : > { %4994 = vrcp.f32 %v2017_v16 }
 0x538   : > { %v4989_v35 = vpop.eup %4988 }
 0x539   : > { %v2074_v26 = vmul.f32 %v4989_v35, %v6019_v28  ;;  %v4866_v35 = vld [vmem:[%s5738_s26 + $0x8] sm:$0xff]  }
 0x53a   : > { %v4991_v15 = vpop.eup %4990 }
 0x53b   : > { %v2073_v36 = vmul.f32 %v4991_v15, %v6021_v4 }
 0x53c   : > { %v4993_v38 = vpop.eup %4992 }
 0x53d   : > { %4592 = vmatprep.mubr.msk.f32.mxu1 %vm1912_vm1, %v2073_v36  ;;  %v2076_v46 = vmul.f32 %v4993_v38, %v6025_v63  ;;  %v4867_v38 = vld [vmem:[%s5738_s26] sm:$0xff]  }
 0x53e   : > { %v4995_v39 = vpop.eup %4994  ;;  %4593 = vmatmul.mubr.msk.f32.vlgmr.msra.gmra.mxu1 %vm1912_vm1, %v2074_v26 }
 0x53f   : > { %4596 = vmatpush3.msra.mxu1 %v5874_v27  ;;  %v2075_v40 = vmul.f32 %v4995_v39, %v6029_v5 }
 0x540   : > { %4597 = vmatprep.subr.mxu1 %v5866_v25 }
 0x541   : > { %4598 = vmatpush3.msra.mxu1 %v5866_v25  ;;  %4599 = vmatprep.mubr.msk.f32.mxu1 %vm1912_vm1, %v2075_v40 }
 0x542   : > { %4609 = vmatprep.subr.mxu1 %v5934_v55  ;;  %4600 = vmatmul.mubr.msk.f32.vlgmr.msra.gmra.mxu1 %vm1912_vm1, %v2076_v46 }
 0x543   : > { %4610 = vmatpush3.msra.mxu1 %v5934_v55 }
 0x544   : > { %4611 = vmatprep.subr.mxu1 %v6005_v49 }
 0x545   : > { %4612 = vmatpush3.msra.mxu1 %v6005_v49 }
 0x546   : > { %4623 = vmatprep.subr.mxu1 %v6011_v50 }
 0x56c   : > { %v2026_v27 = vpop.xlane.xlu1 %2025 }
 0x56d   : > { %4996 = vrcp.f32 %v2026_v27 }
 0x56e   : > { %v2023_v28 = vpop.xlane.xlu0 %2022 }
 0x56f   : > { %4998 = vrcp.f32 %v2023_v28 }
 0x576   : > { %v2032_v4 = vpop.xlane.xlu1 %2031 }
 0x577   : > { %5000 = vrcp.f32 %v2032_v4 }
 0x578   : > { %v2029_v25 = vpop.xlane.xlu0 %2028 }
 0x579   : > { %5002 = vrcp.f32 %v2029_v25 }
 0x57a   : > { %v4997_v63 = vpop.eup %4996 }
 0x57b   : > { %v2078_v55 = vmul.f32 %v4997_v63, %v6039_v31 }
 0x57c   : > { %v4999_v5 = vpop.eup %4998 }
 0x57d   : > { %v2077_v47 = vmul.f32 %v4999_v5, %v6043_v33 }
 0x57f   : > { %4606 = vmatprep.mubr.msk.f32.mxu0 %vm1912_vm1, %v2077_v47 }
 0x580   : > { %4607 = vmatmul.mubr.msk.f32.vlgmr.msra.gmra.mxu0 %vm1912_vm1, %v2078_v55 }
 0x581   : > { %4617 = vmatpush3.msra.mxu0 %v5936_v57 }
 0x582   : > { %4618 = vmatprep.subr.mxu0 %v2430_v21  ;;  %v2044_v49 = vpop.xlane.xlu1 %2043 }
 0x583   : > { %4619 = vmatpush3.msra.mxu0 %v2430_v21  ;;  %5004 = vrcp.f32 %v2044_v49 }
 0x584   : > { %4630 = vmatprep.subr.mxu0 %v6103_v24  ;;  %v2041_v48 = vpop.xlane.xlu0 %2040  ;;  %v5001_v51 = vpop.eup %5000 }
 0x585   : > { %5006 = vrcp.f32 %v2041_v48  ;;  %v2080_v53 = vmul.f32 %v5001_v51, %v6050_v44 }
 0x586   : > { %v5003_v52 = vpop.eup %5002  ;;  %v2038_v30 = vpop.xlane.xlu1 %2037 }
 0x587   : > { %v2079_v33 = vmul.f32 %v5003_v52, %v6055_v22  ;;  %5008 = vrcp.f32 %v2038_v30 }
 0x588   : > { %v2035_v31 = vpop.xlane.xlu0 %2034 }
 0x589   : > { %5010 = vrcp.f32 %v2035_v31  ;;  %4613 = vmatprep.mubr.msk.f32.mxu1 %vm1912_vm1, %v2079_v33 }
 0x58a   : > { %v2056_v57 = vpop.xlane.xlu1 %2055  ;;  %4614 = vmatmul.mubr.msk.f32.vlgmr.msra.gmra.mxu1 %vm1912_vm1, %v2080_v53 }
 0x58b   : > { %4624 = vmatpush3.msra.mxu1 %v6011_v50  ;;  %5012 = vrcp.f32 %v2056_v57 }
 0x58c   : > { %4625 = vmatprep.subr.mxu1 %v6099_v20  ;;  %v2053_v29 = vpop.xlane.xlu0 %2052 }
 0x58d   : > { %4626 = vmatpush3.msra.mxu1 %v6099_v20  ;;  %5014 = vrcp.f32 %v2053_v29  ;;  %v4863_v20 = vld [vmem:[%s5738_s26 + $0x20] sm:$0xff]  }
 0x58e   : > { %4637 = vmatprep.subr.mxu1 %v6101_v23  ;;  %v2050_v22 = vpop.xlane.xlu1 %2049 }
 0x58f   : > { %5016 = vrcp.f32 %v2050_v22 }
 0x590   : > { %v2047_v44 = vpop.xlane.xlu0 %2046  ;;  %v5005_v54 = vpop.eup %5004 }
 0x591   : > { %5018 = vrcp.f32 %v2047_v44  ;;  %v2084_v58 = vmul.f32 %v5005_v54, %v6063_v2 }
 0x592   : > { %v5007_v56 = vpop.eup %5006  ;;  %v2691_v60 = vpop.permute.xlu1 %2690 }
 0x593   : > { %v2083_v32 = vmul.f32 %v5007_v56, %v6067_v3 }
 0x594   : > { %v5009_v50 = vpop.eup %5008  ;;  %v2604_v2 = vpop.permute.xlu0 %2603 }
 0x595   : > { %4627 = vmatprep.mubr.msk.f32.mxu1 %vm1912_vm1, %v2083_v32  ;;  %v2082_v0 = vmul.f32 %v5009_v50, %v6071_v41 }
 0x596   : > { %v5011_v59 = vpop.eup %5010  ;;  %4628 = vmatmul.mubr.msk.f32.vlgmr.msra.gmra.mxu1 %vm1912_vm1, %v2084_v58 }
 0x597   : > { %4638 = vmatpush3.msra.mxu1 %v6101_v23  ;;  %v2081_v62 = vmul.f32 %v5011_v59, %v6075_v6 }
 0x598   : > { %4639 = vmatprep.subr.mxu1 %v2691_v60  ;;  %v5013_v1 = vpop.eup %5012 }
 0x599   : > { %4640 = vmatpush3.msra.mxu1 %v2691_v60  ;;  %4620 = vmatprep.mubr.msk.f32.mxu0 %vm1912_vm1, %v2081_v62  ;;  %v2088_v3 = vmul.f32 %v5013_v1, %v6079_v8 }
 0x59a   : > { %v5015_v37 = vpop.eup %5014  ;;  %4621 = vmatmul.mubr.msk.f32.vlgmr.msra.gmra.mxu0 %vm1912_vm1, %v2082_v0 }
 0x59b   : > { %4631 = vmatpush3.msra.mxu0 %v6103_v24  ;;  %v2087_v61 = vmul.f32 %v5015_v37, %v6083_v12 }
 0x59c   : > { %4632 = vmatprep.subr.mxu0 %v2604_v2  ;;  %v5017_v42 = vpop.eup %5016 }
 0x59d   : > { %4633 = vmatpush3.msra.mxu0 %v2604_v2  ;;  %4641 = vmatprep.mubr.msk.f32.mxu1 %vm1912_vm1, %v2087_v61  ;;  %v2086_v6 = vmul.f32 %v5017_v42, %v6087_v14  ;;  %v4862_v14 = vld [vmem:[%s5738_s26 + $0x28] sm:$0xff]  }
 0x59e   : > { %v5019_v41 = vpop.eup %5018  ;;  %4642 = vmatmul.mubr.msk.f32.vlgmr.msra.gmra.mxu1 %vm1912_vm1, %v2088_v3  ;;  %4644 = vmatprep.subr.bf16.mxu0 %v4860_v7 }
 0x59f   : > { %v2085_v45 = vmul.f32 %v5019_v41, %v6091_v18  ;;  %3279 = vmatprep.mubr.bf16.mxu1 %v5358_v43  ;;  %v4861_v18 = vld [vmem:[%s5738_s26 + $0x30] sm:$0xff]  }
 0x5a1   : > { %4634 = vmatprep.mubr.msk.f32.mxu0 %vm1912_vm1, %v2085_v45 }
 0x5a2   : > { %4635 = vmatmul.mubr.msk.f32.vlgmr.msra.gmra.mxu0 %vm1912_vm1, %v2086_v6 }
 0x5a3   : > { %4645 = vmatpush3.bf16.msra.mxu0 %v4860_v7  ;;  %v4267_v7 = vld [vmem:[%s814_s12] ss:$0 sm:$0xff] }
 0x5a4   : > { %4646 = vmatprep.subr.bf16.mxu0 %v4861_v18 }
 0x5a7   : > { %4647 = vmatpush3.bf16.msra.mxu0 %v4861_v18 }
 0x5a8   : > { %4648 = vmatprep.subr.bf16.mxu0 %v4862_v14 }
 0x5ab   : > { %4649 = vmatpush3.bf16.msra.mxu0 %v4862_v14 }
 0x5ac   : > { %4650 = vmatprep.subr.bf16.mxu0 %v4863_v20 }
 0x5af   : > { %4651 = vmatpush3.bf16.msra.mxu0 %v4863_v20  ;;  %v5029_v20 = vld [vmem:[#allocation2 + $0x18] sm:$0xff] }
 0x5b0   : > { %4652 = vmatprep.subr.bf16.mxu0 %v4864_v11 }
 0x5b3   : > { %4653 = vmatpush3.bf16.msra.mxu0 %v4864_v11  ;;  %v5031_v11 = vld [vmem:[#allocation2 + $0x8] sm:$0xff] }
 0x5b4   : > { %4654 = vmatprep.subr.bf16.mxu0 %v4865_v34 }
 0x5b7   : > { %4655 = vmatpush3.bf16.msra.mxu0 %v4865_v34 }
 0x5b8   : > { %4656 = vmatprep.subr.bf16.mxu0 %v4866_v35 }
 0x5bb   : > { %4657 = vmatpush3.bf16.msra.mxu0 %v4866_v35  ;;  %v4870_v35 = vld [vmem:[%s5741_s21 + $0xe4] ss:$16 sps:$4 sm:$0xff]  }
 0x5bc   : > { %4658 = vmatprep.subr.bf16.mxu0 %v4867_v38  ;;  %3247 = vmatprep.subr.bf16.mxu1 %v4870_v35 }
 0x5bf   : > { %4659 = vmatpush3.bf16.msra.mxu0 %v4867_v38 }
 0x5fe   : > { %v6155_v8 = vpop.f32.mrf.mxu1 }
 0x600   : > { %v6157_v10 = vpop.f32.mrf.mxu1 }
 0x602   : > { %v6160_v19 = vpop.f32.mrf.mxu1 }
 0x604   : > { %v2242_v21 = vpop.f32.mrf.mxu1 }
 0x640   : > { %v4608_v12 = vpop.f32.mrf.mxu0 }
 0x642   : > { %v2331_v13 = vpop.f32.mrf.mxu0 }
 0x643   : > { %v4798_v17 = vpack.i.bf16 %v4608_v12, %v2331_v13 }
 0x645   : > { %4799 = vrot.lane.b32.xlu0 %v4798_v17, %s5361_s3  ;;  %v5028_v17 = vld [vmem:[#allocation2 + $0x10] sm:$0xff] }
 0x64a   : > { %v4615_v23 = vpop.f32.mrf.mxu1 }
 0x64c   : > { %v2420_v24 = vpop.f32.mrf.mxu1 }
 0x64d   : > { %v4803_v9 = vpack.i.bf16 %v4615_v23, %v2420_v24  ;;  %v5030_v24 = vld [vmem:[#allocation2] sm:$0xff] }
 0x64f   : > { %4804 = vrot.lane.b32.xlu1 %v4803_v9, %s5361_s3 }
 0x656   : > { %v4629_v16 = vpop.f32.mrf.mxu1 }
 0x658   : > { %v2594_v15 = vpop.f32.mrf.mxu1 }
 0x659   : > { %v4808_v36 = vpack.i.bf16 %v4629_v16, %v2594_v15  ;;  %v4868_v16 = vld [vmem:[%s5741_s21 + $0xe0] ss:$16 sps:$4 sm:$0xff]   ;;  %v4871_v15 = vld [vmem:[%s5741_s21 + $0xe8] ss:$16 sps:$4 sm:$0xff]  }
 0x65a   : > { %v4622_v26 = vpop.f32.mrf.mxu0  ;;  %3248 = vmatpush1.bf16.msra.mxu1 %v4868_v16 }
 0x65b   : > { %4809 = vrot.lane.b32.xlu1 %v4808_v36, %s5360_s4  ;;  %v4873_v36 = vld [vmem:[%s5741_s21 + $0xec] ss:$16 sps:$4 sm:$0xff]  }
 0x65c   : > { %v2507_v39 = vpop.f32.mrf.mxu0  ;;  %3300 = vmatprep.subr.bf16.mxu0 %v4873_v36 }
 0x65d   : > { %v4813_v40 = vpack.i.bf16 %v4622_v26, %v2507_v39 }
 0x65e   : > { %v4643_v46 = vpop.f32.mrf.mxu1 }
 0x65f   : > { %4814 = vrot.lane.b32.xlu0 %v4813_v40, %s5360_s4 }
 0x660   : > { %v2768_v27 = vpop.f32.mrf.mxu1 }
 0x661   : > { %v4823_v28 = vpack.i.bf16 %v4643_v46, %v2768_v27 }
 0x662   : > { %v4636_v4 = vpop.f32.mrf.mxu0 }
 0x663   : > { %4824 = vrot.lane.b32.xlu1 %v4823_v28, %s5359_s23 }
 0x664   : > { %v2681_v25 = vpop.f32.mrf.mxu0 }
 0x665   : > { %v4818_v63 = vpack.i.bf16 %v4636_v4, %v2681_v25 }
 0x667   : > { %4819 = vrot.lane.b32.xlu0 %v4818_v63, %s5359_s23 }
 0x6b7   : > { %v4800_v47 = vpop.permute.xlu0 %4799 }
 0x6b8   : > { %v4802_v48 = vunpack.i.h.bf16 %v4800_v47  ;;  %v4801_v51 = vunpack.i.l.bf16 %v4800_v47 }
 0x6ba   : > { %v2826_v54 = vsel %vm1173_vm0, %v6155_v8, %v4802_v48  ;;  %v2825_v56 = vsel %vm1173_vm0, %v6157_v10, %v4801_v51 }
 0x6c1   : > { %v4805_v5 = vpop.permute.xlu1 %4804 }
 0x6c2   : > { %v4807_v52 = vunpack.i.h.bf16 %v4805_v5  ;;  %v4806_v30 = vunpack.i.l.bf16 %v4805_v5 }
 0x6c4   : > { %v2828_v32 = vsel %vm1173_vm0, %v6160_v19, %v4807_v52  ;;  %v2827_v58 = vsel %vm1173_vm0, %v2242_v21, %v4806_v30  ;;  %v4876_v52 = vld [vmem:[%s5741_s21 + $0xc4] ss:$16 sps:$4 sm:$0xff]   ;;  %v4879_v30 = vld [vmem:[%s5741_s21 + $0xcc] ss:$16 sps:$4 sm:$0xff]  }
 0x6c5   : > { %3249 = vmatprep.subr.bf16.mxu1 %v4876_v52 }
 0x6cd   : > { %v4810_v55 = vpop.permute.xlu1 %4809 }
 0x6ce   : > { %v4812_v31 = vunpack.i.h.bf16 %v4810_v55  ;;  %v4811_v53 = vunpack.i.l.bf16 %v4810_v55 }
 0x6d0   : > { %v2833_v59 = vsel %vm2829_vm2, %v2828_v32, %v4812_v31  ;;  %v2832_v60 = vsel %vm2829_vm2, %v2827_v58, %v4811_v53  ;;  %v4877_v31 = vld [vmem:[%s5741_s21 + $0xc8] ss:$16 sps:$4 sm:$0xff]   ;;  %v4882_v53 = vld [vmem:[%s5741_s21 + $0xa4] ss:$16 sps:$4 sm:$0xff]   ;;  %v4892_v58 = vld [vmem:[%s5741_s21 + $0x60] ss:$16 sps:$4 sm:$0xff]  }
 0x6d1   : > { %v4815_v49 = vpop.permute.xlu0 %4814  ;;  %v4889_v32 = vld [vmem:[%s5741_s21 + $0x88] ss:$16 sps:$4 sm:$0xff]  }
 0x6d2   : > { %v4817_v57 = vunpack.i.h.bf16 %v4815_v49  ;;  %v4816_v29 = vunpack.i.l.bf16 %v4815_v49 }
 0x6d4   : > { %v2830_v1 = vsel %vm2829_vm2, %v2825_v56, %v4816_v29  ;;  %v2831_v37 = vsel %vm2829_vm2, %v2826_v54, %v4817_v57  ;;  %v4885_v57 = vld [vmem:[%s5741_s21 + $0xac] ss:$16 sps:$4 sm:$0xff]   ;;  %v4880_v29 = vld [vmem:[%s5741_s21 + $0xa0] ss:$16 sps:$4 sm:$0xff]  }
 0x6d5   : > { %v4825_v33 = vpop.permute.xlu1 %4824  ;;  %v4891_v54 = vld [vmem:[%s5741_s21 + $0x8c] ss:$16 sps:$4 sm:$0xff]   ;;  %v4886_v56 = vld [vmem:[%s5741_s21 + $0x80] ss:$16 sps:$4 sm:$0xff]  }
 0x6d6   : > { %v4827_v22 = vunpack.i.h.bf16 %v4825_v33  ;;  %v4826_v44 = vunpack.i.l.bf16 %v4825_v33  ;;  %v4874_v33 = vld [vmem:[%s5741_s21 + $0xc0] ss:$16 sps:$4 sm:$0xff]  }
 0x6d7   : > { %3250 = vmatpush1.bf16.msra.mxu1 %v4874_v33  ;;  %v4918_v33 = vld [vmem:[%s5743_s10 + $0x38] sm:$0xff]  }
 0x6d8   : > { %v2838_v2 = vsel %vm2834_vm3, %v2833_v59, %v4827_v22  ;;  %v2837_v61 = vsel %vm2834_vm3, %v2832_v60, %v4826_v44  ;;  %v4883_v22 = vld [vmem:[%s5741_s21 + $0xa8] ss:$16 sps:$4 sm:$0xff]   ;;  %3251 = vmatprep.subr.bf16.mxu1 %v4882_v53  ;;  %v4888_v44 = vld [vmem:[%s5741_s21 + $0x84] ss:$16 sps:$4 sm:$0xff]   ;;  %v4897_v60 = vld [vmem:[%s5741_s21 + $0x6c] ss:$16 sps:$4 sm:$0xff]  }
 0x6d9   : > { %v4820_v50 = vpop.permute.xlu0 %4819  ;;  %v2840_v45 = vpack.c.bf16 %v2838_v2, %v2837_v61  ;;  %v4895_v59 = vld [vmem:[%s5741_s21 + $0x68] ss:$16 sps:$4 sm:$0xff]   ;;  %v4906_v2 = vld [vmem:[%s5741_s21 + $0x24] ss:$16 sps:$4 sm:$0xff]   ;;  %v4909_v61 = vld [vmem:[%s5741_s21 + $0x2c] ss:$16 sps:$4 sm:$0xff]  }
 0x6da   : > { %v4822_v62 = vunpack.i.h.bf16 %v4820_v50  ;;  %v4821_v0 = vunpack.i.l.bf16 %v4820_v50  ;;  %v4894_v50 = vld [vmem:[%s5741_s21 + $0x64] ss:$16 sps:$4 sm:$0xff]  }
 0x6db   : > { %3252 = vmatpush1.bf16.msra.mxu1 %v4880_v29  ;;  %v4921_v53 = vld [vmem:[%s5743_s10 + $0xf0] sm:$0xff]  }
 0x6dc   : > { %v2835_v3 = vsel %vm2834_vm3, %v2830_v1, %v4821_v0  ;;  %v2836_v42 = vsel %vm2834_vm3, %v2831_v37, %v4822_v62  ;;  %3253 = vmatprep.subr.bf16.mxu1 %v4888_v44  ;;  %v4900_v62 = vld [vmem:[%s5741_s21 + $0x44] ss:$16 sps:$4 sm:$0xff]   ;;  %v4903_v0 = vld [vmem:[%s5741_s21 + $0x4c] ss:$16 sps:$4 sm:$0xff]   ;;  %v4898_v1 = vld [vmem:[%s5741_s21 + $0x40] ss:$16 sps:$4 sm:$0xff]  }
 0x6dd   : > { %v2839_v41 = vpack.c.bf16 %v2836_v42, %v2835_v3  ;;  %v4901_v37 = vld [vmem:[%s5741_s21 + $0x48] ss:$16 sps:$4 sm:$0xff]   ;;  %v4904_v3 = vld [vmem:[%s5741_s21 + $0x20] ss:$16 sps:$4 sm:$0xff]  }
 0x6de   : > { %v4907_v42 = vld [vmem:[%s5741_s21 + $0x28] ss:$16 sps:$4 sm:$0xff]   ;;  %v4923_v29 = vld [vmem:[%s5743_s10 + $0xb0] sm:$0xff]  }
 0x6df   : > { %4660 = vmatprep.mubr.bf16.mxu0 %v2839_v41  ;;  %3254 = vmatpush1.bf16.msra.mxu1 %v4886_v56  ;;  %v4912_v41 = vld [vmem:[%s5741_s21 + $0x4] ss:$16 sps:$4 sm:$0xff]   ;;  %v4925_v44 = vld [vmem:[%s5743_s10 + $0xe8] sm:$0xff]  }
 0x6e0   : > { %4661 = vmatmul.mubr.bf16.vlgmr.msra.gmra.mxu0 %v2840_v45  ;;  %3255 = vmatprep.subr.bf16.mxu1 %v4894_v50  ;;  %v4915_v45 = vld [vmem:[%s5741_s21 + $0xc] ss:$16 sps:$4 sm:$0xff]   ;;  %v4929_v50 = vld [vmem:[%s5743_s10 + $0xe0] sm:$0xff]  }
 0x6e1   : > { %3332 = vmatprep.mubr.bf16.mxu0 %v5358_v43  ;;  %3301 = vmatpush1.bf16.msra.mxu0 %v4871_v15 }
 0x6e2   : > { %3302 = vmatprep.subr.bf16.mxu0 %v4879_v30 }
 0x6e3   : > { %3256 = vmatpush1.bf16.msra.mxu1 %v4892_v58  ;;  %v4928_v58 = vld [vmem:[%s5743_s10 + $0x60] sm:$0xff]  }
 0x6e4   : > { %3257 = vmatprep.subr.bf16.mxu1 %v4900_v62  ;;  %v4932_v62 = vld [vmem:[%s5743_s10 + $0x58] sm:$0xff]  }
 0x6e5   : > { %3303 = vmatpush1.bf16.msra.mxu0 %v4877_v31  ;;  %v4919_v31 = vld [vmem:[%s5743_s10 + $0xb8] sm:$0xff]  }
 0x6e6   : > { %3304 = vmatprep.subr.bf16.mxu0 %v4885_v57 }
 0x6e7   : > { %3258 = vmatpush1.bf16.msra.mxu1 %v4898_v1  ;;  %v4934_v1 = vld [vmem:[%s5743_s10 + $0x18] sm:$0xff]  }
 0x6e8   : > { %3259 = vmatprep.subr.bf16.mxu1 %v4906_v2  ;;  %v4936_v2 = vld [vmem:[%s5743_s10 + $0x50] sm:$0xff]  }
 0x6e9   : > { %3305 = vmatpush1.bf16.msra.mxu0 %v4883_v22  ;;  %v4924_v22 = vld [vmem:[%s5743_s10 + $0x68] sm:$0xff]  }
 0x6ea   : > { %3306 = vmatprep.subr.bf16.mxu0 %v4891_v54 }
 0x6eb   : > { %3260 = vmatpush1.bf16.msra.mxu1 %v4904_v3  ;;  %v4938_v3 = vld [vmem:[%s5743_s10 + $0x10] sm:$0xff]  }
 0x6ec   : > { %3261 = vmatprep.subr.bf16.mxu1 %v4912_v41  ;;  %v4940_v41 = vld [vmem:[%s5743_s10 + $0x48] sm:$0xff]  }
 0x6ed   : > { %3307 = vmatpush1.bf16.msra.mxu0 %v4889_v32  ;;  %v4927_v32 = vld [vmem:[%s5743_s10 + $0xa8] sm:$0xff]  }
 0x6ee   : > { %3308 = vmatprep.subr.bf16.mxu0 %v4897_v60  ;;  %v4931_v60 = vld [vmem:[%s5743_s10 + $0xa0] sm:$0xff]  }
 0x6f1   : > { %3309 = vmatpush1.bf16.msra.mxu0 %v4895_v59  ;;  %v4930_v59 = vld [vmem:[%s5743_s10 + $0x20] sm:$0xff]  }
 0x6f2   : > { %3310 = vmatprep.subr.bf16.mxu0 %v4903_v0  ;;  %v4933_v0 = vld [vmem:[%s5743_s10 + $0xd8] sm:$0xff]  }
 0x6f5   : > { %3311 = vmatpush1.bf16.msra.mxu0 %v4901_v37  ;;  %v4935_v37 = vld [vmem:[%s5743_s10 + $0x98] sm:$0xff]  }
 0x6f6   : > { %3312 = vmatprep.subr.bf16.mxu0 %v4909_v61  ;;  %v4937_v61 = vld [vmem:[%s5743_s10 + $0xd0] sm:$0xff]  }
 0x6f9   : > { %3313 = vmatpush1.bf16.msra.mxu0 %v4907_v42  ;;  %v4939_v42 = vld [vmem:[%s5743_s10 + $0x90] sm:$0xff]  }
 0x6fa   : > { %3314 = vmatprep.subr.bf16.mxu0 %v4915_v45  ;;  %v4941_v45 = vld [vmem:[%s5743_s10 + $0xc8] sm:$0xff]  }
 0x7a0   : > { %v4662_v6 = vpop.f32.mrf.mxu0 }
 0x7a1   : > { %v2955_v13 = vadd.f32 %v4662_v6, %v4267_v7  ;;  %v4910_v6 = vld [vmem:[%s5741_s21] ss:$16 sps:$4 sm:$0xff]  }
 0x7a2   : > { %v2946_v8 = vpop.f32.mrf.mxu0  ;;  %3262 = vmatpush1.bf16.msra.mxu1 %v4910_v6  ;;  %v4942_v6 = vld [vmem:[%s5743_s10 + $0x8] sm:$0xff]  }
 0x7a3   : > { %v2947_v10 = vadd.f32 %v4267_v7, %v2946_v8  ;;  %v6194_v21 = vadd.f32 %v5029_v20, %v2955_v13  ;;  %v4916_v8 = vld [vmem:[%s5743_s10 + $0x78] sm:$0xff]  }
 0x7a4   : > { %v4663_v12 = vpop.f32.mrf.mxu0  ;;  %4446 = vmatprep.subr.bf16.mxu1 %v4916_v8  ;;  %v4944_v8 = vld [vmem:[%s5743_s10 + $0x40] sm:$0xff]  }
 0x7a5   : > { %v6191_v18 = vadd.f32 %v5028_v17, %v2947_v10  ;;  %v2958_v23 = vadd.f32 %v4663_v12, %v4267_v7  ;;  %v4917_v10 = vld [vmem:[%s5743_s10 + $0xf8] sm:$0xff]  }
 0x7a6   : > { %v2949_v19 = vpop.f32.mrf.mxu0 }
 0x7a7   : > { %v2950_v14 = vadd.f32 %v4267_v7, %v2949_v19  ;;  %2967 = vadd.xlane.f32.xlu0 %v6191_v18  ;;  %v6200_v34 = vadd.f32 %v5031_v11, %v2958_v23  ;;  %v4913_v7 = vld [vmem:[%s5741_s21 + $0x8] ss:$16 sps:$4 sm:$0xff]  }
 0x7a8   : > { %3315 = vmatpush1.bf16.msra.mxu0 %v4913_v7  ;;  %v4943_v7 = vld [vmem:[%s5743_s10 + $0x88] sm:$0xff]  }
 0x7a9   : > { %v6196_v9 = vadd.f32 %v5030_v24, %v2950_v14  ;;  %4474 = vmatprep.subr.bf16.mxu0 %v4917_v10  ;;  %v4945_v10 = vld [vmem:[%s5743_s10 + $0xc0] sm:$0xff]  }
 0x7ab   : > { %2969 = vadd.xlane.f32.xlu1 %v6196_v9  ;;  %2971 = vadd.xlane.f32.xlu0 %v6194_v21 }
 0x7af   : > { %2973 = vadd.xlane.f32.xlu0 %v6200_v34 }
 0x830   : > { %v2968_v26 = vpop.xlane.xlu0 %2967 }
 0x831   : > { %v2975_v38 = vmul.f32 0.0078125, %v2968_v26 }
 0x833   : > { %v6208_v39 = vsub.f32 %v6191_v18, %v2975_v38  ;;  %v4276_v38 = vld [vmem:[%s817_s17] ss:$0 sm:$0xff] }
 0x834   : > { %v2970_v40 = vpop.xlane.xlu1 %2969  ;;  %v2972_v46 = vpop.xlane.xlu0 %2971 }
 0x835   : > { %v2976_v27 = vmul.f32 0.0078125, %v2970_v40  ;;  %v2977_v28 = vmul.f32 0.0078125, %v2972_v46  ;;  %v2983_v4 = vmul.f32 %v6208_v39, %v6208_v39 }
 0x837   : > { %v6213_v25 = vsub.f32 %v6196_v9, %v2976_v27  ;;  %v6216_v63 = vsub.f32 %v6194_v21, %v2977_v28  ;;  %2987 = vadd.xlane.f32.xlu0 %v2983_v4  ;;  %v4277_v4 = vld [vmem:[%s6436_s30] ss:$0 sm:$0xff] }
 0x838   : > { %v2974_v5 = vpop.xlane.xlu0 %2973 }
 0x839   : > { %v2978_v47 = vmul.f32 0.0078125, %v2974_v5  ;;  %v2984_v55 = vmul.f32 %v6213_v25, %v6213_v25  ;;  %v2985_v49 = vmul.f32 %v6216_v63, %v6216_v63 }
 0x83b   : > { %v6223_v48 = vsub.f32 %v6200_v34, %v2978_v47  ;;  %2989 = vadd.xlane.f32.xlu1 %v2984_v55  ;;  %2991 = vadd.xlane.f32.xlu0 %v2985_v49 }
 0x83d   : > { %v2986_v51 = vmul.f32 %v6223_v48, %v6223_v48 }
 0x83f   : > { %2993 = vadd.xlane.f32.xlu1 %v2986_v51 }
 0x8c0   : > { %v2988_v12 = vpop.xlane.xlu0 %2987 }
 0x8c1   : > { %v2995_v13 = vmul.f32 0.0078125, %v2988_v12  ;;  %v4946_v12 = vld [vmem:[%s5743_s10] sm:$0xff]  }
 0x8c3   : > { %v2999_v17 = vadd.f32 1e-05, %v2995_v13  ;;  %v4947_v13 = vld [vmem:[%s5743_s10 + $0x80] sm:$0xff]  }
 0x8c4   : > { %v2990_v19 = vpop.xlane.xlu1 %2989  ;;  %v2992_v14 = vpop.xlane.xlu0 %2991 }
 0x8c5   : > { %5020 = vrsqrt.f32 %v2999_v17  ;;  %v2996_v20 = vmul.f32 0.0078125, %v2990_v19  ;;  %v2997_v23 = vmul.f32 0.0078125, %v2992_v14  ;;  %v3067_v17 = vlaneseq }
 0x8c7   : > { %v3000_v24 = vadd.f32 1e-05, %v2996_v20  ;;  %v3001_v11 = vadd.f32 1e-05, %v2997_v23  ;;  %v3068_v19 = vshrl.u32 %v3067_v17, 7 }
 0x8c8   : > { %v2994_v16 = vpop.xlane.xlu1 %2993 }
 0x8c9   : > { %5022 = vrsqrt.f32 %v3000_v24  ;;  %v2998_v35 = vmul.f32 0.0078125, %v2994_v16  ;;  %v3073_v14 = vsub.s32 1, %v3068_v19  ;;  %v3081_v20 = vsub.s32 3, %v3068_v19 }
 0x8ca   : > { %5024 = vrsqrt.f32 %v3001_v11  ;;  %v3069_v23 = vsub.s32 0, %v3068_v19  ;;  %v3077_v24 = vsub.s32 2, %v3068_v19  ;;  %v3065_v11 = vld [vmem:[%s5777_s11] sm:$0xf] }
 0x8cb   : > { %v3002_v15 = vadd.f32 1e-05, %v2998_v35 }
 0x8cd   : > { %5026 = vrsqrt.f32 %v3002_v15  ;;  %v3074_v15 = vrot.slane %v3065_v11, %v3073_v14 }
 0x8d2   : > { %v5021_v36 = vpop.eup %5020 }
 0x8d3   : > { %v3007_v26 = vmul.f32 %v5021_v36, %v6208_v39  ;;  %v3082_v36 = vrot.slane %v3065_v11, %v3081_v20 }
 0x8d5   : > { %v3017_v27 = vmul.f32 %v4276_v38, %v3007_v26  ;;  %v3070_v26 = vrot.slane %v3065_v11, %v3069_v23 }
 0x8d6   : > { %v5023_v40 = vpop.eup %5022 }
 0x8d7   : > { %v3008_v46 = vmul.f32 %v5023_v40, %v6213_v25  ;;  %v5025_v28 = vpop.eup %5024  ;;  %v3027_v55 = vadd.f32 %v4277_v4, %v3017_v27  ;;  %v4920_v25 = vld [vmem:[%s5743_s10 + $0x70] sm:$0xff]  }
 0x8d8   : > { %v3009_v39 = vmul.f32 %v5025_v28, %v6216_v63 }
 0x8d9   : > { %v3018_v5 = vmul.f32 %v4276_v38, %v3008_v46 }
 0x8da   : > { %v5027_v47 = vpop.eup %5026  ;;  %v3019_v57 = vmul.f32 %v4276_v38, %v3009_v39 }
 0x8db   : > { %v3028_v49 = vadd.f32 %v4277_v4, %v3018_v5  ;;  %v3010_v51 = vmul.f32 %v5027_v47, %v6223_v48  ;;  %v4922_v48 = vld [vmem:[%s5743_s10 + $0x30] sm:$0xff]  }
 0x8dc   : > { %v3029_v54 = vadd.f32 %v4277_v4, %v3019_v57 }
 0x8dd   : > { %v3031_v52 = vpack.c.bf16 %v3028_v49, %v3027_v55  ;;  %v3020_v30 = vmul.f32 %v4276_v38, %v3010_v51  ;;  %v3078_v38 = vrot.slane %v3065_v11, %v3077_v24 }
 0x8df   : > { %3280 = vmatmul.mubr.bf16.vlgmr.msra.gmra.mxu1 %v3031_v52  ;;  %3333 = vmatmul.mubr.bf16.vlgmr.msra.gmra.mxu0 %v3031_v52  ;;  %v3030_v63 = vadd.f32 %v4277_v4, %v3020_v30 }
 0x8e0   : > { %3289 = vmatprep.mubr.bf16.mxu1 %v5358_v43  ;;  %3342 = vmatprep.mubr.bf16.mxu0 %v5358_v43  ;;  %v4926_v43 = vld [vmem:[%s5743_s10 + $0x28] sm:$0xff]  }
 0x8e1   : > { %4447 = vmatpush3.bf16.msra.mxu1 %v4918_v33  ;;  %4475 = vmatpush3.bf16.msra.mxu0 %v4919_v31  ;;  %v3032_v56 = vpack.c.bf16 %v3030_v63, %v3029_v54 }
 0x8e2   : > { %4448 = vmatprep.subr.bf16.mxu1 %v4920_v25  ;;  %4476 = vmatprep.subr.bf16.mxu0 %v4921_v53 }
 0x8e5   : > { %4449 = vmatpush3.bf16.msra.mxu1 %v4922_v48  ;;  %4477 = vmatpush3.bf16.msra.mxu0 %v4923_v29 }
 0x8e6   : > { %4450 = vmatprep.subr.bf16.mxu1 %v4924_v22  ;;  %4478 = vmatprep.subr.bf16.mxu0 %v4925_v44 }
 0x8e7   : > { %3290 = vmatmul.mubr.bf16.gmra.mxu1 %v3032_v56  ;;  %3343 = vmatmul.mubr.bf16.gmra.mxu0 %v3032_v56 }
 0x8e9   : > { %4451 = vmatpush3.bf16.msra.mxu1 %v4926_v43  ;;  %4479 = vmatpush3.bf16.msra.mxu0 %v4927_v32 }
 0x8ea   : > { %4452 = vmatprep.subr.bf16.mxu1 %v4928_v58  ;;  %4480 = vmatprep.subr.bf16.mxu0 %v4929_v50 }
 0x8ed   : > { %4453 = vmatpush3.bf16.msra.mxu1 %v4930_v59  ;;  %4481 = vmatpush3.bf16.msra.mxu0 %v4931_v60 }
 0x8ee   : > { %4454 = vmatprep.subr.bf16.mxu1 %v4932_v62  ;;  %4482 = vmatprep.subr.bf16.mxu0 %v4933_v0 }
 0x8f1   : > { %4455 = vmatpush3.bf16.msra.mxu1 %v4934_v1  ;;  %4483 = vmatpush3.bf16.msra.mxu0 %v4935_v37 }
 0x8f2   : > { %4456 = vmatprep.subr.bf16.mxu1 %v4936_v2  ;;  %4484 = vmatprep.subr.bf16.mxu0 %v4937_v61 }
 0x8f5   : > { %4457 = vmatpush3.bf16.msra.mxu1 %v4938_v3  ;;  %4485 = vmatpush3.bf16.msra.mxu0 %v4939_v42 }
 0x8f6   : > { %4458 = vmatprep.subr.bf16.mxu1 %v4940_v41  ;;  %4486 = vmatprep.subr.bf16.mxu0 %v4941_v45 }
 0x8f9   : > { %4459 = vmatpush3.bf16.msra.mxu1 %v4942_v6  ;;  %4487 = vmatpush3.bf16.msra.mxu0 %v4943_v7 }
 0x8fa   : > { %4460 = vmatprep.subr.bf16.mxu1 %v4944_v8  ;;  %4488 = vmatprep.subr.bf16.mxu0 %v4945_v10 }
 0x8fd   : > { %4461 = vmatpush3.bf16.msra.mxu1 %v4946_v12  ;;  %4489 = vmatpush3.bf16.msra.mxu0 %v4947_v13 }
 0x99f   : > { %v3281_v16 = vpop.f32.mrf.mxu1  ;;  %v3334_v35 = vpop.f32.mrf.mxu0 }
 0x9a0   : > { %v3282_v49 = vadd.f32 %v3281_v16, %v3070_v26  ;;  %v3335_v39 = vadd.f32 %v3334_v35, %v3078_v38 }
 0x9a1   : > { %v3283_v40 = vpop.f32.mrf.mxu1  ;;  %v3336_v46 = vpop.f32.mrf.mxu0 }
 0x9a2   : > { %v3284_v4 = vadd.f32 %v3283_v40, %v3074_v15  ;;  %v3337_v5 = vadd.f32 %v3336_v46, %v3082_v36  ;;  %v3353_v44 = vmax.f32 %v3282_v49, 0.0  ;;  %v3355_v54 = vmax.f32 %v3335_v39, 0.0 }
 0x9a3   : > { %v3285_v27 = vpop.f32.mrf.mxu1  ;;  %v3338_v28 = vpop.f32.mrf.mxu0 }
 0x9a4   : > { %v3286_v47 = vadd.f32 %v3285_v27, %v3070_v26  ;;  %v3339_v55 = vadd.f32 %v3338_v28, %v3078_v38  ;;  %v3354_v63 = vmax.f32 %v3284_v4, 0.0  ;;  %v3356_v48 = vmax.f32 %v3337_v5, 0.0  ;;  %v4342_v28 = vld [vmem:[%s824_s29] ss:$0 sm:$0xff] }
 0x9a5   : > { %v3287_v51 = vpop.f32.mrf.mxu1  ;;  %v3340_v52 = vpop.f32.mrf.mxu0 }
 0x9a6   : > { %v3288_v30 = vadd.f32 %v3287_v51, %v3074_v15  ;;  %v3341_v33 = vadd.f32 %v3340_v52, %v3082_v36  ;;  %v3357_v31 = vmax.f32 %v3286_v47, 0.0  ;;  %v3359_v25 = vmax.f32 %v3339_v55, 0.0 }
 0x9a7   : > { %v3291_v53 = vpop.f32.mrf.mxu1  ;;  %v3344_v57 = vpop.f32.mrf.mxu0 }
 0x9a8   : > { %v3358_v29 = vmax.f32 %v3288_v30, 0.0  ;;  %v3360_v22 = vmax.f32 %v3341_v33, 0.0  ;;  %v3369_v50 = vpack.c.bf16 %v3357_v31, %v3353_v44  ;;  %v3371_v59 = vpack.c.bf16 %v3359_v25, %v3355_v54 }
 0x9a9   : > { %v3293_v56 = vpop.f32.mrf.mxu1  ;;  %v3346_v43 = vpop.f32.mrf.mxu0  ;;  %v3292_v61 = vadd.f32 %v3291_v53, %v3070_v26  ;;  %v3345_v3 = vadd.f32 %v3344_v57, %v3078_v38 }
 0x9aa   : > { %v3370_v32 = vpack.c.bf16 %v3358_v29, %v3354_v63  ;;  %v3372_v58 = vpack.c.bf16 %v3360_v22, %v3356_v48  ;;  %v3294_v60 = vadd.f32 %v3293_v56, %v3074_v15  ;;  %v3347_v1 = vadd.f32 %v3346_v43, %v3082_v36 }
 0x9ab   : > { %v3295_v62 = vpop.f32.mrf.mxu1  ;;  %v3348_v0 = vpop.f32.mrf.mxu0  ;;  %v3361_v19 = vmax.f32 %v3292_v61, 0.0  ;;  %v3363_v14 = vmax.f32 %v3345_v3, 0.0 }
 0x9ac   : > { %v3296_v37 = vadd.f32 %v3295_v62, %v3070_v26  ;;  %v3349_v2 = vadd.f32 %v3348_v0, %v3078_v38  ;;  %3665 = vmatprep.mubr.bf16.mxu1 %v3370_v32  ;;  %3714 = vmatprep.mubr.bf16.mxu0 %v3372_v58  ;;  %v3362_v10 = vmax.f32 %v3294_v60, 0.0  ;;  %v3364_v12 = vmax.f32 %v3347_v1, 0.0 }
 0x9ad   : > { %v3297_v42 = vpop.f32.mrf.mxu1  ;;  %v3350_v41 = vpop.f32.mrf.mxu0  ;;  %3666 = vmatmul.mubr.bf16.vlgmr.msra.gmra.mxu1 %v3369_v50  ;;  %3715 = vmatmul.mubr.bf16.vlgmr.msra.gmra.mxu0 %v3371_v59 }
 0x9ae   : > { %v3298_v45 = vadd.f32 %v3297_v42, %v3074_v15  ;;  %v3351_v6 = vadd.f32 %v3350_v41, %v3082_v36  ;;  %v3365_v7 = vmax.f32 %v3296_v37, 0.0  ;;  %v3367_v8 = vmax.f32 %v3349_v2, 0.0 }
 0x9b0   : > { %v3366_v13 = vmax.f32 %v3298_v45, 0.0  ;;  %v3368_v17 = vmax.f32 %v3351_v6, 0.0  ;;  %v3373_v24 = vpack.c.bf16 %v3365_v7, %v3361_v19  ;;  %v3375_v11 = vpack.c.bf16 %v3367_v8, %v3363_v14 }
 0x9b2   : > { %v3374_v20 = vpack.c.bf16 %v3366_v13, %v3362_v10  ;;  %v3376_v23 = vpack.c.bf16 %v3368_v17, %v3364_v12 }
 0x9b4   : > { %3673 = vmatprep.mubr.bf16.mxu1 %v3374_v20  ;;  %3722 = vmatprep.mubr.bf16.mxu0 %v3376_v23 }
 0x9b5   : > { %3674 = vmatmul.mubr.bf16.gmra.mxu1 %v3373_v24  ;;  %3723 = vmatmul.mubr.bf16.gmra.mxu0 %v3375_v11 }
 0xa6d   : > { %v4462_v16 = vpop.f32.mrf.mxu1  ;;  %v4490_v35 = vpop.f32.mrf.mxu0 }
 0xa6f   : > { %v4463_v15 = vpop.f32.mrf.mxu1  ;;  %v4491_v36 = vpop.f32.mrf.mxu0 }
 0xa70   : > { %v4464_v26 = vadd.f32 %v4463_v15, %v4462_v16  ;;  %v4492_v38 = vadd.f32 %v4491_v36, %v4490_v35 }
 0xa71   : > { %v4465_v40 = vpop.f32.mrf.mxu1  ;;  %v4493_v46 = vpop.f32.mrf.mxu0 }
 0xa72   : > { %v3717_v27 = vadd.f32 %v4492_v38, %v4464_v26 }
 0xa73   : > { %v4466_v4 = vpop.f32.mrf.mxu1  ;;  %v4494_v5 = vpop.f32.mrf.mxu0 }
 0xa74   : > { %v3731_v47 = vadd.f32 %v3717_v27, %v6191_v18  ;;  %v4467_v55 = vadd.f32 %v4466_v4, %v4465_v40  ;;  %v4495_v49 = vadd.f32 %v4494_v5, %v4493_v46 }
 0xa75   : > { %v4468_v39 = vpop.f32.mrf.mxu1  ;;  %v4496_v51 = vpop.f32.mrf.mxu0 }
 0xa76   : > { %v3742_v52 = vadd.f32 %v4342_v28, %v3731_v47  ;;  %v3720_v30 = vadd.f32 %v4495_v49, %v4467_v55 }
 0xa77   : > { %v4469_v33 = vpop.f32.mrf.mxu1  ;;  %v4497_v31 = vpop.f32.mrf.mxu0 }
 0xa78   : > { %3746 = vst [vmem:[#allocation2 + $0x10] sm:$0xff] %v3742_v52  ;;  %v3732_v25 = vadd.f32 %v3720_v30, %v6196_v9  ;;  %v4470_v53 = vadd.f32 %v4469_v33, %v4468_v39  ;;  %v4498_v57 = vadd.f32 %v4497_v31, %v4496_v51 }
 0xa79   : > { %v4471_v63 = vpop.f32.mrf.mxu1  ;;  %v4499_v48 = vpop.f32.mrf.mxu0 }
 0xa7a   : > { %v3743_v29 = vadd.f32 %v4342_v28, %v3732_v25  ;;  %v3725_v22 = vadd.f32 %v4498_v57, %v4470_v53 }
 0xa7b   : > { %v4472_v44 = vpop.f32.mrf.mxu1  ;;  %v4500_v54 = vpop.f32.mrf.mxu0 }
 0xa7c   : > { %3747 = vst [vmem:[#allocation2] sm:$0xff] %v3743_v29  ;;  %v3733_v18 = vadd.f32 %v3725_v22, %v6194_v21  ;;  %v4473_v56 = vadd.f32 %v4472_v44, %v4471_v63  ;;  %v4501_v43 = vadd.f32 %v4500_v54, %v4499_v48 }
 0xa7e   : > { %v3744_v32 = vadd.f32 %v4342_v28, %v3733_v18  ;;  %v3728_v58 = vadd.f32 %v4501_v43, %v4473_v56 }
 0xa80   : > { %3748 = vst [vmem:[#allocation2 + $0x18] sm:$0xff] %v3744_v32  ;;  %v3734_v50 = vadd.f32 %v3728_v58, %v6200_v34  ;;  %3753 = sbr.rel (%p4343_p4) target bundleno = 3211 (0xc8b), region = 128 }
 0xa82   : > { %v3745_v59 = vadd.f32 %v4342_v28, %v3734_v50 }
 0xa84   : > { %3749 = vst [vmem:[#allocation2 + $0x8] sm:$0xff] %v3745_v59 }
 0xa85   : > { %3756 = vadd.xlane.f32.xlu0 %v3742_v52  ;;  %3760 = vadd.xlane.f32.xlu1 %v3744_v32  ;;  %v5032_v8 = vld [vmem:[#allocation13 + $0x38] sm:$0xff]   ;;  %v5033_v10 = vld [vmem:[#allocation13 + $0x30] sm:$0xff]   ;;  %v5034_v12 = vld [vmem:[#allocation13 + $0x28] sm:$0xff]  }
 0xa86   : > { %4664 = vmatprep.subr.bf16.mxu0 %v5032_v8  ;;  %v5035_v13 = vld [vmem:[#allocation13 + $0x20] sm:$0xff]   ;;  %v5036_v17 = vld [vmem:[#allocation13 + $0x18] sm:$0xff]   ;;  %v5037_v19 = vld [vmem:[#allocation13 + $0x10] sm:$0xff]  }
 0xa87   : > { %4665 = vmatpush3.bf16.msra.mxu0 %v5032_v8  ;;  %v5038_v14 = vld [vmem:[#allocation13 + $0x8] sm:$0xff]   ;;  %v5039_v20 = vld [vmem:[#allocation13] sm:$0xff]  }
 0xa88   : > { %4666 = vmatprep.subr.bf16.mxu0 %v5033_v10  ;;  %v4344_v5 = vld [vmem:[%s6438_s20] ss:$0 sm:$0xff] }
 0xa89   : > { %3758 = vadd.xlane.f32.xlu0 %v3743_v29  ;;  %3762 = vadd.xlane.f32.xlu1 %v3745_v59  ;;  %v4345_v51 = vld [vmem:[%s6439_s14] ss:$0 sm:$0xff] }
 0xa8a   : > { %v4346_v54 = vld [vmem:[%s6440_s8] ss:$0 sm:$0xff] }
 0xa8b   : > { %4667 = vmatpush3.bf16.msra.mxu0 %v5033_v10 }
 0xa8c   : > { %4668 = vmatprep.subr.bf16.mxu0 %v5034_v12 }
 0xa8f   : > { %4669 = vmatpush3.bf16.msra.mxu0 %v5034_v12 }
 0xa90   : > { %4670 = vmatprep.subr.bf16.mxu0 %v5035_v13 }
 0xa93   : > { %4671 = vmatpush3.bf16.msra.mxu0 %v5035_v13 }
 0xa94   : > { %4672 = vmatprep.subr.bf16.mxu0 %v5036_v17 }
 0xa97   : > { %4673 = vmatpush3.bf16.msra.mxu0 %v5036_v17 }
 0xa98   : > { %4674 = vmatprep.subr.bf16.mxu0 %v5037_v19 }
 0xa9b   : > { %4675 = vmatpush3.bf16.msra.mxu0 %v5037_v19 }
 0xa9c   : > { %4676 = vmatprep.subr.bf16.mxu0 %v5038_v14 }
 0xa9f   : > { %4677 = vmatpush3.bf16.msra.mxu0 %v5038_v14 }
 0xaa0   : > { %4678 = vmatprep.subr.bf16.mxu0 %v5039_v20 }
 0xaa3   : > { %4679 = vmatpush3.bf16.msra.mxu0 %v5039_v20 }
 0xb0e   : > { %v3757_v9 = vpop.xlane.xlu0 %3756  ;;  %v3761_v60 = vpop.xlane.xlu1 %3760 }
 0xb0f   : > { %v3764_v62 = vmul.f32 0.0078125, %v3757_v9  ;;  %v3766_v21 = vmul.f32 0.0078125, %v3761_v60 }
 0xb11   : > { %v3768_v0 = vsub.f32 %v3742_v52, %v3764_v62  ;;  %v6311_v1 = vsub.f32 %v3744_v32, %v3766_v21 }
 0xb12   : > { %v3759_v37 = vpop.xlane.xlu0 %3758  ;;  %v3763_v2 = vpop.xlane.xlu1 %3762 }
 0xb13   : > { %v3765_v61 = vmul.f32 0.0078125, %v3759_v37  ;;  %v3772_v34 = vmul.f32 %v3768_v0, %v3768_v0  ;;  %v3767_v3 = vmul.f32 0.0078125, %v3763_v2  ;;  %v3774_v45 = vmul.f32 %v6311_v1, %v6311_v1 }
 0xb15   : > { %v3769_v42 = vsub.f32 %v3743_v29, %v3765_v61  ;;  %3776 = vadd.xlane.f32.xlu0 %v3772_v34  ;;  %v3771_v41 = vsub.f32 %v3745_v59, %v3767_v3 }
 0xb17   : > { %v3773_v6 = vmul.f32 %v3769_v42, %v3769_v42  ;;  %v3775_v7 = vmul.f32 %v3771_v41, %v3771_v41 }
 0xb19   : > { %3780 = vadd.xlane.f32.xlu0 %v3774_v45  ;;  %3778 = vadd.xlane.f32.xlu1 %v3773_v6 }
 0xb1d   : > { %3782 = vadd.xlane.f32.xlu1 %v3775_v7 }
 0xb9e   : > { %v3777_v23 = vpop.xlane.xlu0 %3776 }
 0xb9f   : > { %v3784_v24 = vmul.f32 0.0078125, %v3777_v23 }
 0xba1   : > { %v3788_v11 = vadd.f32 1e-05, %v3784_v24 }
 0xba2   : > { %v3779_v16 = vpop.xlane.xlu1 %3778  ;;  %v3781_v35 = vpop.xlane.xlu0 %3780 }
 0xba3   : > { %5040 = vrsqrt.f32 %v3788_v11  ;;  %v3785_v15 = vmul.f32 0.0078125, %v3779_v16  ;;  %v3786_v36 = vmul.f32 0.0078125, %v3781_v35 }
 0xba5   : > { %v3789_v26 = vadd.f32 1e-05, %v3785_v15  ;;  %v3790_v38 = vadd.f32 1e-05, %v3786_v36 }
 0xba6   : > { %v3783_v40 = vpop.xlane.xlu1 %3782 }
 0xba7   : > { %5042 = vrsqrt.f32 %v3789_v26  ;;  %v3787_v46 = vmul.f32 0.0078125, %v3783_v40 }
 0xba8   : > { %5044 = vrsqrt.f32 %v3790_v38 }
 0xba9   : > { %v3791_v27 = vadd.f32 1e-05, %v3787_v46 }
 0xbab   : > { %5046 = vrsqrt.f32 %v3791_v27 }
 0xbb0   : > { %v5041_v28 = vpop.eup %5040 }
 0xbb1   : > { %v3796_v4 = vmul.f32 %v5041_v28, %v3768_v0 }
 0xbb3   : > { %v3806_v39 = vmul.f32 %v4344_v5, %v3796_v4 }
 0xbb4   : > { %v5043_v47 = vpop.eup %5042 }
 0xbb5   : > { %v5045_v55 = vpop.eup %5044  ;;  %v3797_v49 = vmul.f32 %v5043_v47, %v3769_v42  ;;  %v3816_v31 = vadd.f32 %v4345_v51, %v3806_v39 }
 0xbb6   : > { %v3798_v52 = vmul.f32 %v5045_v55, %v6311_v1 }
 0xbb7   : > { %v3807_v30 = vmul.f32 %v4344_v5, %v3797_v49 }
 0xbb8   : > { %v5047_v33 = vpop.eup %5046  ;;  %v3808_v57 = vmul.f32 %v4344_v5, %v3798_v52 }
 0xbb9   : > { %v3817_v25 = vadd.f32 %v4345_v51, %v3807_v30  ;;  %v3799_v53 = vmul.f32 %v5047_v33, %v3771_v41 }
 0xbba   : > { %v3818_v29 = vadd.f32 %v4345_v51, %v3808_v57 }
 0xbbb   : > { %v3820_v63 = vpack.c.bf16 %v3817_v25, %v3816_v31  ;;  %v3809_v48 = vmul.f32 %v4344_v5, %v3799_v53 }
 0xbbd   : > { %4680 = vmatprep.mubr.bf16.mxu0 %v3820_v63  ;;  %v3819_v22 = vadd.f32 %v4345_v51, %v3809_v48 }
 0xbbf   : > { %v3821_v44 = vpack.c.bf16 %v3819_v22, %v3818_v29 }
 0xbc1   : > { %4681 = vmatmul.mubr.bf16.vlgmr.msra.gmra.mxu0 %v3821_v44 }
 0xc81   : > { %v4682_v18 = vpop.f32.mrf.mxu0 }
 0xc82   : > { %v3936_v56 = vadd.f32 %v4682_v18, %v4346_v54 }
 0xc83   : > { %v3927_v43 = vpop.f32.mrf.mxu0 }
 0xc84   : > { %3944 = vst [vmem:[#allocation14 + $0x10] sm:$0xff] %v3936_v56  ;;  %v3928_v32 = vadd.f32 %v4346_v54, %v3927_v43 }
 0xc85   : > { %v4683_v58 = vpop.f32.mrf.mxu0 }
 0xc86   : > { %3942 = vst [vmem:[#allocation14] sm:$0xff] %v3928_v32  ;;  %v3939_v50 = vadd.f32 %v4683_v58, %v4346_v54 }
 0xc87   : > { %v3930_v59 = vpop.f32.mrf.mxu0 }
 0xc88   : > { %3945 = vst [vmem:[#allocation14 + $0x18] sm:$0xff] %v3939_v50  ;;  %v3931_v9 = vadd.f32 %v4346_v54, %v3930_v59 }
 0xc8a   : > { %3943 = vst [vmem:[#allocation14 + $0x8] sm:$0xff] %v3931_v9 }
 0xc8b PF: > { %p4746_p9 = scmp.eq.s32.totalorder %s5474_s28, 1  ;;  %s5362_s9 = smov [#allocation14]  }
 0xc8c   : > { %s3952_s18 = sshll.u32 %s5362_s9, 4  ;;  %s3953_s18 = int_to_ptr.vmem [resolvable:$true] %s3952_s18 }
 0xc8d   : > { %s5266_s19 = scalar_lea.vmem %s3953_s18, 512  ;;  %p5273_p12 = scmp.lt.s32.totalorder %s3953_s18, %s3953_s18 }
 0xc8e   : > { %p5267_p8 = scmp.ne.s32.totalorder %s3953_s18, %s5266_s19  ;;  %p5274_p2 = scmp.lt.s32.totalorder %s5266_s19, %s5266_s19 }
 0xc90   : > { %p5268_p10 = pnand %p5267_p8, %p4746_p9  ;;  %p5275_p13 = por %p5274_p2, %p5273_p12 }
 0xc92   : > { %p5269_p5 = pneg %p5268_p10 }
 0xc94   : > { %p5276_p3 = pnand %p5275_p13, %p5269_p5 }
 0xc96   : > { %5279 = shalt.err (!%p5276_p3)
}
 0xc97   : > { %s5363_s22 = smov 128   ;;  %s5364_s24 = smov 8  }
 0xc98   : > { %s6441_s3 = sld [smem:[#allocation38_spill]] }
 0xc9e   : > { %4710 = dma.vmem_to_hbm [thread:$0]  (%p4746_p9), %s3953_s18, 512, %s6441_s3, [#allocation5], %s5363_s22, %s5363_s22, %s5364_s24  }
 0xc9f   : > { %5323 = dma.done.wait (%p4746_p9), [#allocation5], 512  }
 0xca0   : > { %5325 = vsyncadd (%p4746_p9), [#allocation5], 4294966784 }
 0xca1 PF: > { %s6442_s27 = sld [smem:[#allocation21_spill]]  ;;  %s6445_s24 = smov %s5332_s25 }
 0xca2   : > { %s6443_s26 = sld [smem:[#allocation20_spill]] }
 0xca3   : > { %s6444_s5 = sld [smem:[#allocation22_spill]] }
 0xca7   : > { %p27_p0 = scmp.ge.s32.totalorder %s6442_s27, 4  }
 0xca8   : > { %s6446_s25 = smov %s6443_s26 }
 0xca9   : > { %s6447_s26 = smov %s6444_s5  ;;  %29 = sbr.rel (!%p27_p0) target bundleno = 21 (0x15), region = 206 }
 0xcae   :  { %3968 = vsyncpa [#allocation4], 1 }
 0xcaf   :  { %3970 = vsyncpa [#allocation4 + $0x1], 1 }
 0xcb0   :  { %3971 = vsyncpa [#allocation7], 1 }
 0xcb1   :  { %3972 = vsyncpa [#allocation5], 1 }
 0xcb2   :  { %3974 = vsyncpa [#allocation5 + $0x1], 1 }

</bundles_post_ra>
